<compile_context>
chip_gen: v7x
topology: tpu7x:2x2x1
jax: 0.10.0
libtpu: 0.0.40
codegen_flags: <defaults>
</compile_context>

<pallas_src>
import jax
import jax.numpy as jnp
from jax.experimental import pallas as pl
from jax.experimental.pallas import tpu as pltpu


def _round_up(x, m):
    return ((x + m - 1) // m) * m


def _char_decoder_kernel(x_ref, wx_ref, wh_ref, b_ref, wout_ref, bout_ref,
                         h0_ref, c0_ref,
                         scores_ref, h_out_ref, c_out_ref,
                         xg_s, h_all_s):
    L, B, E = x_ref.shape
    Hp = h0_ref.shape[1]
    Vp = wout_ref.shape[1]
    G = 4 * Hp

    # ---- Phase 1: batched input-side gate pre-activations (one MXU call). ----
    # xg[t*B + b, :] = x[t, b, :] @ W_x + (b_ih + b_hh)  for every time step.
    x_flat = x_ref[...].reshape(L * B, E)
    xg = (jnp.dot(x_flat, wx_ref[...], preferred_element_type=jnp.float32)
          + b_ref[...])
    xg_s[...] = xg.reshape(L, B, G)

    # ---- Phase 2: serial LSTM recurrence (only h @ W_hh on critical path). ----
    wh = wh_ref[...]  # hoisted: loaded once, reused every step

    def step(t, carry):
        h_prev, c_prev = carry
        gates = (jnp.dot(h_prev, wh, preferred_element_type=jnp.float32)
                 + xg_s[t])
        # Hp is a multiple of 128 -> each gate slice is a lane-aligned view.
        i_g = jax.nn.sigmoid(gates[:, 0 * Hp:1 * Hp])
        f_g = jax.nn.sigmoid(gates[:, 1 * Hp:2 * Hp])
        g_g = jnp.tanh(gates[:, 2 * Hp:3 * Hp])
        o_g = jax.nn.sigmoid(gates[:, 3 * Hp:4 * Hp])
        c_new = f_g * c_prev + i_g * g_g
        h_new = o_g * jnp.tanh(c_new)
        h_all_s[t] = h_new
        return (h_new, c_new)

    h_T, c_T = jax.lax.fori_loop(0, L, step, (h0_ref[...], c0_ref[...]),
                                 unroll=(L <= 32))

    # ---- Phase 3: batched, lane-dense vocab projection (one MXU call). ----
    h_flat = h_all_s[...].reshape(L * B, Hp)
    scores = (jnp.dot(h_flat, wout_ref[...], preferred_element_type=jnp.float32)
              + bout_ref[...])
    scores_ref[...] = scores.reshape(L, B, Vp).astype(scores_ref.dtype)

    # Final LSTM state, written exactly once.
    h_out_ref[...] = h_T
    c_out_ref[...] = c_T


def char_decoder_forward(tokens, emb_table, w_ih, w_hh, b_ih, b_hh,
                         w_out, b_out, dec_hidden=None):
    """Pallas equivalent of CharDecoder.forward.

    tokens: (L, B) int32
    emb_table: (V, E)   w_ih: (4H, E)  w_hh: (4H, H)  b_*: (4H,)
    w_out: (V, H)  b_out: (V,)
    dec_hidden: optional tuple of (1, B, H) tensors
    returns: scores (L, B, V), (h, c) each (1, B, H)
    """
    L, B = tokens.shape
    E = emb_table.shape[1]
    H = w_hh.shape[1]
    V = w_out.shape[0]
    Hp = _round_up(H, 128)   # gate/hidden padding -> lane-aligned gate slices
    Vp = _round_up(V, 128)   # vocab padding -> lane-dense scores store

    # Embedding gather (data-dependent gather; done in JAX glue, not in-kernel).
    # TODO(synk): for very large vocabularies this could become an in-kernel
    # manual-DMA gather (pl.ANY + make_async_copy); at char-vocab sizes the
    # table fits VMEM and the XLA gather is negligible.
    x_emb = emb_table[tokens].astype(jnp.float32)            # (L, B, E)

    # --- weight re-layout / padding (gate order i, f, g, o as in PyTorch) ---
    # In a real model these would be pre-laid-out once at parameter load time.
    wih_g = w_ih.reshape(4, H, E)                            # (gate, out, in_E)
    whh_g = w_hh.reshape(4, H, H)                            # (gate, out, in_H)
    b_g = (b_ih + b_hh).reshape(4, H)

    wx = jnp.zeros((E, 4, Hp), jnp.float32).at[:, :, :H].set(
        jnp.transpose(wih_g, (2, 0, 1)))
    wx = wx.reshape(E, 4 * Hp)                               # (E, 4*Hp)

    wh = jnp.zeros((Hp, 4, Hp), jnp.float32).at[:H, :, :H].set(
        jnp.transpose(whh_g, (2, 0, 1)))
    wh = wh.reshape(Hp, 4 * Hp)                              # (Hp, 4*Hp)

    bias = jnp.zeros((4, Hp), jnp.float32).at[:, :H].set(b_g).reshape(1, 4 * Hp)

    wout_t = jnp.zeros((Hp, Vp), jnp.float32).at[:H, :V].set(jnp.transpose(w_out))
    bout = jnp.zeros((1, Vp), jnp.float32).at[:, :V].set(b_out.reshape(1, V))

    if dec_hidden is None:
        h0 = jnp.zeros((B, Hp), jnp.float32)
        c0 = jnp.zeros((B, Hp), jnp.float32)
    else:
        h0 = jnp.zeros((B, Hp), jnp.float32).at[:, :H].set(dec_hidden[0].reshape(B, H))
        c0 = jnp.zeros((B, Hp), jnp.float32).at[:, :H].set(dec_hidden[1].reshape(B, H))

    # TODO(synk): on v7x a leading "parallel" grid axis over batch shards could
    # use both TensorCores; skipped because B=8 shards would fall below the
    # (8,128) tile minimum at these shapes.
    scores_p, h_out, c_out = pl.pallas_call(
        _char_decoder_kernel,
        out_shape=(
            jax.ShapeDtypeStruct((L, B, Vp), jnp.float32),
            jax.ShapeDtypeStruct((B, Hp), jnp.float32),
            jax.ShapeDtypeStruct((B, Hp), jnp.float32),
        ),
        grid_spec=pltpu.PrefetchScalarGridSpec(
            num_scalar_prefetch=0,
            grid=(1,),
            in_specs=[
                pl.BlockSpec((L, B, E), lambda i: (0, 0, 0)),     # x_emb
                pl.BlockSpec((E, 4 * Hp), lambda i: (0, 0)),      # W_x (stacked gates)
                pl.BlockSpec((Hp, 4 * Hp), lambda i: (0, 0)),     # W_h (stacked gates)
                pl.BlockSpec((1, 4 * Hp), lambda i: (0, 0)),      # bias
                pl.BlockSpec((Hp, Vp), lambda i: (0, 0)),         # W_out^T
                pl.BlockSpec((1, Vp), lambda i: (0, 0)),          # b_out
                pl.BlockSpec((B, Hp), lambda i: (0, 0)),          # h0
                pl.BlockSpec((B, Hp), lambda i: (0, 0)),          # c0
            ],
            out_specs=[
                pl.BlockSpec((L, B, Vp), lambda i: (0, 0, 0)),    # scores (padded V)
                pl.BlockSpec((B, Hp), lambda i: (0, 0)),          # h_T
                pl.BlockSpec((B, Hp), lambda i: (0, 0)),          # c_T
            ],
            scratch_shapes=[
                pltpu.VMEM((L, B, 4 * Hp), jnp.float32),          # x-side gate preacts
                pltpu.VMEM((L, B, Hp), jnp.float32),              # per-step hidden states
            ],
        ),
        compiler_params=pltpu.CompilerParams(
            dimension_semantics=("arbitrary",),
        ),
    )(x_emb, wx, wh, bias, wout_t, bout, h0, c0)

    scores = scores_p[:, :, :V]
    h_T = h_out[:, :H].reshape(1, B, H)
    c_T = c_out[:, :H].reshape(1, B, H)
    return scores, (h_T, c_T)


def _reference_forward(tokens, emb_table, w_ih, w_hh, b_ih, b_hh,
                       w_out, b_out, dec_hidden=None):
    """Pure-JAX reference of the PyTorch semantics (for validation)."""
    L, B = tokens.shape
    H = w_hh.shape[1]
    x_emb = emb_table[tokens]
    if dec_hidden is None:
        h = jnp.zeros((B, H), jnp.float32)
        c = jnp.zeros((B, H), jnp.float32)
    else:
        h, c = dec_hidden[0][0], dec_hidden[1][0]

    def step(carry, x_t):
        h, c = carry
        gates = x_t @ w_ih.T + b_ih + h @ w_hh.T + b_hh
        i = jax.nn.sigmoid(gates[:, 0 * H:1 * H])
        f = jax.nn.sigmoid(gates[:, 1 * H:2 * H])
        g = jnp.tanh(gates[:, 2 * H:3 * H])
        o = jax.nn.sigmoid(gates[:, 3 * H:4 * H])
        c = f * c + i * g
        h = o * jnp.tanh(c)
        return (h, c), h @ w_out.T + b_out

    (h, c), scores = jax.lax.scan(step, (h, c), x_emb)
    return scores, (h[None], c[None])


if __name__ == "__main__":
    # Small deterministic configuration.
    L, B = 8, 8                # seq length, batch
    V = 64                     # character vocab size
    E = 32                     # char embedding size
    H = 32                     # LSTM hidden size
    PAD_IDX = 0

    key = jax.random.PRNGKey(0)
    keys = jax.random.split(key, 10)

    emb_table = 0.1 * jax.random.normal(keys[0], (V, E), jnp.float32)
    emb_table = emb_table.at[PAD_IDX].set(0.0)     # padding_idx row is zeroed
    w_ih = 0.1 * jax.random.normal(keys[1], (4 * H, E), jnp.float32)
    w_hh = 0.1 * jax.random.normal(keys[2], (4 * H, H), jnp.float32)
    b_ih = 0.1 * jax.random.normal(keys[3], (4 * H,), jnp.float32)
    b_hh = 0.1 * jax.random.normal(keys[4], (4 * H,), jnp.float32)
    w_out = 0.1 * jax.random.normal(keys[5], (V, H), jnp.float32)
    b_out = 0.1 * jax.random.normal(keys[6], (V,), jnp.float32)

    tokens = jax.random.randint(keys[7], (L, B), 0, V, jnp.int32)
    h0 = 0.1 * jax.random.normal(keys[8], (1, B, H), jnp.float32)
    c0 = 0.1 * jax.random.normal(keys[9], (1, B, H), jnp.float32)

    scores, (h_T, c_T) = char_decoder_forward(
        tokens, emb_table, w_ih, w_hh, b_ih, b_hh, w_out, b_out,
        dec_hidden=(h0, c0))
    jax.block_until_ready((scores, h_T, c_T))

    # Validate against a pure-JAX reference.
    ref_scores, (ref_h, ref_c) = _reference_forward(
        tokens, emb_table, w_ih, w_hh, b_ih, b_hh, w_out, b_out,
        dec_hidden=(h0, c0))
    assert scores.shape == (L, B, V)
    assert h_T.shape == (1, B, H) and c_T.shape == (1, B, H)
    assert jnp.allclose(scores, ref_scores, atol=5e-3, rtol=5e-3)
    assert jnp.allclose(h_T, ref_h, atol=5e-3, rtol=5e-3)
    assert jnp.allclose(c_T, ref_c, atol=5e-3, rtol=5e-3)

    print("KERNEL_OK")
</pallas_src>

<mosaic_0001>
module attributes {stable_mosaic.version = 11 : i64} {
  func.func @_char_decoder_kernel(%arg0: i32, %arg1: memref<8x8x32xf32, #tpu.memory_space<vmem>>, %arg2: memref<32x512xf32, #tpu.memory_space<vmem>>, %arg3: memref<128x512xf32, #tpu.memory_space<vmem>>, %arg4: memref<1x512xf32, #tpu.memory_space<vmem>>, %arg5: memref<128x128xf32, #tpu.memory_space<vmem>>, %arg6: memref<1x128xf32, #tpu.memory_space<vmem>>, %arg7: memref<8x128xf32, #tpu.memory_space<vmem>>, %arg8: memref<8x128xf32, #tpu.memory_space<vmem>>, %arg9: memref<8x8x128xf32, #tpu.memory_space<vmem>>, %arg10: memref<8x128xf32, #tpu.memory_space<vmem>>, %arg11: memref<8x128xf32, #tpu.memory_space<vmem>>, %arg12: memref<8x8x512xf32, #tpu.memory_space<vmem>>, %arg13: memref<8x8x128xf32, #tpu.memory_space<vmem>>) attributes {dimension_semantics = [#tpu.dimension_semantics<arbitrary>], iteration_bounds = array<i64: 1>, scalar_prefetch = 0 : i64, scratch_operands = 2 : i64, tpu.core_type = #tpu.core_type<tc>, window_params = [{pipeline_mode = #tpu.pipeline_mode<synchronous>, transform_indices = @transform_0, window_bounds = array<i64: 8, 8, 32>}, {pipeline_mode = #tpu.pipeline_mode<synchronous>, transform_indices = @transform_1, window_bounds = array<i64: 32, 512>}, {pipeline_mode = #tpu.pipeline_mode<synchronous>, transform_indices = @transform_2, window_bounds = array<i64: 128, 512>}, {pipeline_mode = #tpu.pipeline_mode<synchronous>, transform_indices = @transform_3, window_bounds = array<i64: 1, 512>}, {pipeline_mode = #tpu.pipeline_mode<synchronous>, transform_indices = @transform_4, window_bounds = array<i64: 128, 128>}, {pipeline_mode = #tpu.pipeline_mode<synchronous>, transform_indices = @transform_5, window_bounds = array<i64: 1, 128>}, {pipeline_mode = #tpu.pipeline_mode<synchronous>, transform_indices = @transform_6, window_bounds = array<i64: 8, 128>}, {pipeline_mode = #tpu.pipeline_mode<synchronous>, transform_indices = @transform_7, window_bounds = array<i64: 8, 128>}, {pipeline_mode = #tpu.pipeline_mode<synchronous>, transform_indices = @transform_8, window_bounds = array<i64: 8, 8, 128>}, {pipeline_mode = #tpu.pipeline_mode<synchronous>, transform_indices = @transform_9, window_bounds = array<i64: 8, 128>}, {pipeline_mode = #tpu.pipeline_mode<synchronous>, transform_indices = @transform_10, window_bounds = array<i64: 8, 128>}]} {
    %c0 = arith.constant 0 : index
    %c0_0 = arith.constant 0 : index
    %c0_1 = arith.constant 0 : index
    %0 = vector.load %arg1[%c0, %c0_0, %c0_1] : memref<8x8x32xf32, #tpu.memory_space<vmem>>, vector<8x8x32xf32>
    %1 = vector.shape_cast %0 : vector<8x8x32xf32> to vector<64x32xf32>
    %c0_2 = arith.constant 0 : index
    %c0_3 = arith.constant 0 : index
    %2 = vector.load %arg2[%c0_2, %c0_3] : memref<32x512xf32, #tpu.memory_space<vmem>>, vector<32x512xf32>
    %cst = arith.constant dense<0.000000e+00> : vector<64x512xf32>
    %3 = tpu.matmul %1, %2, %cst {dimension_numbers = #tpu.dot_dimension_numbers<[1], [0], [0], [1], [0, 0, 1, 1], [], []>} : vector<64x32xf32>, vector<32x512xf32>, vector<64x512xf32> -> vector<64x512xf32>
    %c0_4 = arith.constant 0 : index
    %c0_5 = arith.constant 0 : index
    %4 = vector.load %arg4[%c0_4, %c0_5] : memref<1x512xf32, #tpu.memory_space<vmem>>, vector<1x512xf32>
    %5 = vector.broadcast %4 : vector<1x512xf32> to vector<64x512xf32>
    %6 = arith.addf %3, %5 : vector<64x512xf32>
    %7 = vector.shape_cast %6 : vector<64x512xf32> to vector<8x8x512xf32>
    %c0_6 = arith.constant 0 : index
    %c0_7 = arith.constant 0 : index
    %c0_8 = arith.constant 0 : index
    %8 = vector.load %arg12[%c0_6, %c0_7, %c0_8] : memref<8x8x512xf32, #tpu.memory_space<vmem>>, vector<8x8x512xf32>
    tpu.vector_store %arg12[%c0_6, %c0_7, %c0_8], %7 {strides = array<i32>} : memref<8x8x512xf32, #tpu.memory_space<vmem>>, vector<8x8x512xf32>,
    %c0_9 = arith.constant 0 : index
    %c0_10 = arith.constant 0 : index
    %9 = vector.load %arg3[%c0_9, %c0_10] : memref<128x512xf32, #tpu.memory_space<vmem>>, vector<128x512xf32>
    %c0_11 = arith.constant 0 : index
    %c0_12 = arith.constant 0 : index
    %10 = vector.load %arg7[%c0_11, %c0_12] : memref<8x128xf32, #tpu.memory_space<vmem>>, vector<8x128xf32>
    %c0_13 = arith.constant 0 : index
    %c0_14 = arith.constant 0 : index
    %11 = vector.load %arg8[%c0_13, %c0_14] : memref<8x128xf32, #tpu.memory_space<vmem>>, vector<8x128xf32>
    %c0_i32 = arith.constant 0 : i32
    %cst_15 = arith.constant dense<0.000000e+00> : vector<8x512xf32>
    %12 = tpu.matmul %10, %9, %cst_15 {dimension_numbers = #tpu.dot_dimension_numbers<[1], [0], [0], [1], [0, 0, 1, 1], [], []>} : vector<8x128xf32>, vector<128x512xf32>, vector<8x512xf32> -> vector<8x512xf32>
    %13 = arith.index_cast %c0_i32 : i32 to index
    %c0_16 = arith.constant 0 : index
    %c0_17 = arith.constant 0 : index
    %14 = vector.load %arg12[%13, %c0_16, %c0_17] : memref<8x8x512xf32, #tpu.memory_space<vmem>>, vector<1x8x512xf32>
    %15 = vector.shape_cast %14 : vector<1x8x512xf32> to vector<8x512xf32>
    %16 = arith.addf %12, %15 : vector<8x512xf32>
    %17 = vector.extract_strided_slice %16 {offsets = [0, 0], sizes = [8, 128], strides = [1, 1]} : vector<8x512xf32> to vector<8x128xf32>
    %18 = arith.negf %17 : vector<8x128xf32>
    %19 = math.exp %18 : vector<8x128xf32>
    %cst_18 = arith.constant 1.000000e+00 : f32
    %20 = vector.broadcast %cst_18 : f32 to vector<8x128xf32>
    %21 = arith.addf %20, %19 : vector<8x128xf32>
    %22 = arith.divf %20, %21 : vector<8x128xf32>
    %23 = vector.extract_strided_slice %16 {offsets = [0, 128], sizes = [8, 128], strides = [1, 1]} : vector<8x512xf32> to vector<8x128xf32>
    %24 = arith.negf %23 : vector<8x128xf32>
    %25 = math.exp %24 : vector<8x128xf32>
    %cst_19 = arith.constant 1.000000e+00 : f32
    %26 = vector.broadcast %cst_19 : f32 to vector<8x128xf32>
    %27 = arith.addf %26, %25 : vector<8x128xf32>
    %28 = arith.divf %26, %27 : vector<8x128xf32>
    %29 = vector.extract_strided_slice %16 {offsets = [0, 256], sizes = [8, 128], strides = [1, 1]} : vector<8x512xf32> to vector<8x128xf32>
    %30 = math.tanh %29 : vector<8x128xf32>
    %31 = vector.extract_strided_slice %16 {offsets = [0, 384], sizes = [8, 128], strides = [1, 1]} : vector<8x512xf32> to vector<8x128xf32>
    %32 = arith.negf %31 : vector<8x128xf32>
    %33 = math.exp %32 : vector<8x128xf32>
    %cst_20 = arith.constant 1.000000e+00 : f32
    %34 = vector.broadcast %cst_20 : f32 to vector<8x128xf32>
    %35 = arith.addf %34, %33 : vector<8x128xf32>
    %36 = arith.divf %34, %35 : vector<8x128xf32>
    %37 = arith.mulf %28, %11 : vector<8x128xf32>
    %38 = arith.mulf %22, %30 : vector<8x128xf32>
    %39 = arith.addf %37, %38 : vector<8x128xf32>
    %40 = math.tanh %39 : vector<8x128xf32>
    %41 = arith.mulf %36, %40 : vector<8x128xf32>
    %42 = arith.index_cast %c0_i32 : i32 to index
    %c0_21 = arith.constant 0 : index
    %c0_22 = arith.constant 0 : index
    %43 = vector.load %arg13[%42, %c0_21, %c0_22] : memref<8x8x128xf32, #tpu.memory_space<vmem>>, vector<1x8x128xf32>
    %44 = vector.shape_cast %43 : vector<1x8x128xf32> to vector<8x128xf32>
    %45 = vector.shape_cast %41 : vector<8x128xf32> to vector<1x8x128xf32>
    tpu.vector_store %arg13[%42, %c0_21, %c0_22], %45 {strides = array<i32>} : memref<8x8x128xf32, #tpu.memory_space<vmem>>, vector<1x8x128xf32>,
    %c1_i32 = arith.constant 1 : i32
    %cst_23 = arith.constant dense<0.000000e+00> : vector<8x512xf32>
    %46 = tpu.matmul %41, %9, %cst_23 {dimension_numbers = #tpu.dot_dimension_numbers<[1], [0], [0], [1], [0, 0, 1, 1], [], []>} : vector<8x128xf32>, vector<128x512xf32>, vector<8x512xf32> -> vector<8x512xf32>
    %47 = arith.index_cast %c1_i32 : i32 to index
    %c0_24 = arith.constant 0 : index
    %c0_25 = arith.constant 0 : index
    %48 = vector.load %arg12[%47, %c0_24, %c0_25] : memref<8x8x512xf32, #tpu.memory_space<vmem>>, vector<1x8x512xf32>
    %49 = vector.shape_cast %48 : vector<1x8x512xf32> to vector<8x512xf32>
    %50 = arith.addf %46, %49 : vector<8x512xf32>
    %51 = vector.extract_strided_slice %50 {offsets = [0, 0], sizes = [8, 128], strides = [1, 1]} : vector<8x512xf32> to vector<8x128xf32>
    %52 = arith.negf %51 : vector<8x128xf32>
    %53 = math.exp %52 : vector<8x128xf32>
    %cst_26 = arith.constant 1.000000e+00 : f32
    %54 = vector.broadcast %cst_26 : f32 to vector<8x128xf32>
    %55 = arith.addf %54, %53 : vector<8x128xf32>
    %56 = arith.divf %54, %55 : vector<8x128xf32>
    %57 = vector.extract_strided_slice %50 {offsets = [0, 128], sizes = [8, 128], strides = [1, 1]} : vector<8x512xf32> to vector<8x128xf32>
    %58 = arith.negf %57 : vector<8x128xf32>
    %59 = math.exp %58 : vector<8x128xf32>
    %cst_27 = arith.constant 1.000000e+00 : f32
    %60 = vector.broadcast %cst_27 : f32 to vector<8x128xf32>
    %61 = arith.addf %60, %59 : vector<8x128xf32>
    %62 = arith.divf %60, %61 : vector<8x128xf32>
    %63 = vector.extract_strided_slice %50 {offsets = [0, 256], sizes = [8, 128], strides = [1, 1]} : vector<8x512xf32> to vector<8x128xf32>
    %64 = math.tanh %63 : vector<8x128xf32>
    %65 = vector.extract_strided_slice %50 {offsets = [0, 384], sizes = [8, 128], strides = [1, 1]} : vector<8x512xf32> to vector<8x128xf32>
    %66 = arith.negf %65 : vector<8x128xf32>
    %67 = math.exp %66 : vector<8x128xf32>
    %cst_28 = arith.constant 1.000000e+00 : f32
    %68 = vector.broadcast %cst_28 : f32 to vector<8x128xf32>
    %69 = arith.addf %68, %67 : vector<8x128xf32>
    %70 = arith.divf %68, %69 : vector<8x128xf32>
    %71 = arith.mulf %62, %39 : vector<8x128xf32>
    %72 = arith.mulf %56, %64 : vector<8x128xf32>
    %73 = arith.addf %71, %72 : vector<8x128xf32>
    %74 = math.tanh %73 : vector<8x128xf32>
    %75 = arith.mulf %70, %74 : vector<8x128xf32>
    %76 = arith.index_cast %c1_i32 : i32 to index
    %c0_29 = arith.constant 0 : index
    %c0_30 = arith.constant 0 : index
    %77 = vector.load %arg13[%76, %c0_29, %c0_30] : memref<8x8x128xf32, #tpu.memory_space<vmem>>, vector<1x8x128xf32>
    %78 = vector.shape_cast %77 : vector<1x8x128xf32> to vector<8x128xf32>
    %79 = vector.shape_cast %75 : vector<8x128xf32> to vector<1x8x128xf32>
    tpu.vector_store %arg13[%76, %c0_29, %c0_30], %79 {strides = array<i32>} : memref<8x8x128xf32, #tpu.memory_space<vmem>>, vector<1x8x128xf32>,
    %c2_i32 = arith.constant 2 : i32
    %cst_31 = arith.constant dense<0.000000e+00> : vector<8x512xf32>
    %80 = tpu.matmul %75, %9, %cst_31 {dimension_numbers = #tpu.dot_dimension_numbers<[1], [0], [0], [1], [0, 0, 1, 1], [], []>} : vector<8x128xf32>, vector<128x512xf32>, vector<8x512xf32> -> vector<8x512xf32>
    %81 = arith.index_cast %c2_i32 : i32 to index
    %c0_32 = arith.constant 0 : index
    %c0_33 = arith.constant 0 : index
    %82 = vector.load %arg12[%81, %c0_32, %c0_33] : memref<8x8x512xf32, #tpu.memory_space<vmem>>, vector<1x8x512xf32>
    %83 = vector.shape_cast %82 : vector<1x8x512xf32> to vector<8x512xf32>
    %84 = arith.addf %80, %83 : vector<8x512xf32>
    %85 = vector.extract_strided_slice %84 {offsets = [0, 0], sizes = [8, 128], strides = [1, 1]} : vector<8x512xf32> to vector<8x128xf32>
    %86 = arith.negf %85 : vector<8x128xf32>
    %87 = math.exp %86 : vector<8x128xf32>
    %cst_34 = arith.constant 1.000000e+00 : f32
    %88 = vector.broadcast %cst_34 : f32 to vector<8x128xf32>
    %89 = arith.addf %88, %87 : vector<8x128xf32>
    %90 = arith.divf %88, %89 : vector<8x128xf32>
    %91 = vector.extract_strided_slice %84 {offsets = [0, 128], sizes = [8, 128], strides = [1, 1]} : vector<8x512xf32> to vector<8x128xf32>
    %92 = arith.negf %91 : vector<8x128xf32>
    %93 = math.exp %92 : vector<8x128xf32>
    %cst_35 = arith.constant 1.000000e+00 : f32
    %94 = vector.broadcast %cst_35 : f32 to vector<8x128xf32>
    %95 = arith.addf %94, %93 : vector<8x128xf32>
    %96 = arith.divf %94, %95 : vector<8x128xf32>
    %97 = vector.extract_strided_slice %84 {offsets = [0, 256], sizes = [8, 128], strides = [1, 1]} : vector<8x512xf32> to vector<8x128xf32>
    %98 = math.tanh %97 : vector<8x128xf32>
    %99 = vector.extract_strided_slice %84 {offsets = [0, 384], sizes = [8, 128], strides = [1, 1]} : vector<8x512xf32> to vector<8x128xf32>
    %100 = arith.negf %99 : vector<8x128xf32>
    %101 = math.exp %100 : vector<8x128xf32>
    %cst_36 = arith.constant 1.000000e+00 : f32
    %102 = vector.broadcast %cst_36 : f32 to vector<8x128xf32>
    %103 = arith.addf %102, %101 : vector<8x128xf32>
    %104 = arith.divf %102, %103 : vector<8x128xf32>
    %105 = arith.mulf %96, %73 : vector<8x128xf32>
    %106 = arith.mulf %90, %98 : vector<8x128xf32>
    %107 = arith.addf %105, %106 : vector<8x128xf32>
    %108 = math.tanh %107 : vector<8x128xf32>
    %109 = arith.mulf %104, %108 : vector<8x128xf32>
    %110 = arith.index_cast %c2_i32 : i32 to index
    %c0_37 = arith.constant 0 : index
    %c0_38 = arith.constant 0 : index
    %111 = vector.load %arg13[%110, %c0_37, %c0_38] : memref<8x8x128xf32, #tpu.memory_space<vmem>>, vector<1x8x128xf32>
    %112 = vector.shape_cast %111 : vector<1x8x128xf32> to vector<8x128xf32>
    %113 = vector.shape_cast %109 : vector<8x128xf32> to vector<1x8x128xf32>
    tpu.vector_store %arg13[%110, %c0_37, %c0_38], %113 {strides = array<i32>} : memref<8x8x128xf32, #tpu.memory_space<vmem>>, vector<1x8x128xf32>,
    %c3_i32 = arith.constant 3 : i32
    %cst_39 = arith.constant dense<0.000000e+00> : vector<8x512xf32>
    %114 = tpu.matmul %109, %9, %cst_39 {dimension_numbers = #tpu.dot_dimension_numbers<[1], [0], [0], [1], [0, 0, 1, 1], [], []>} : vector<8x128xf32>, vector<128x512xf32>, vector<8x512xf32> -> vector<8x512xf32>
    %115 = arith.index_cast %c3_i32 : i32 to index
    %c0_40 = arith.constant 0 : index
    %c0_41 = arith.constant 0 : index
    %116 = vector.load %arg12[%115, %c0_40, %c0_41] : memref<8x8x512xf32, #tpu.memory_space<vmem>>, vector<1x8x512xf32>
    %117 = vector.shape_cast %116 : vector<1x8x512xf32> to vector<8x512xf32>
    %118 = arith.addf %114, %117 : vector<8x512xf32>
    %119 = vector.extract_strided_slice %118 {offsets = [0, 0], sizes = [8, 128], strides = [1, 1]} : vector<8x512xf32> to vector<8x128xf32>
    %120 = arith.negf %119 : vector<8x128xf32>
    %121 = math.exp %120 : vector<8x128xf32>
    %cst_42 = arith.constant 1.000000e+00 : f32
    %122 = vector.broadcast %cst_42 : f32 to vector<8x128xf32>
    %123 = arith.addf %122, %121 : vector<8x128xf32>
    %124 = arith.divf %122, %123 : vector<8x128xf32>
    %125 = vector.extract_strided_slice %118 {offsets = [0, 128], sizes = [8, 128], strides = [1, 1]} : vector<8x512xf32> to vector<8x128xf32>
    %126 = arith.negf %125 : vector<8x128xf32>
    %127 = math.exp %126 : vector<8x128xf32>
    %cst_43 = arith.constant 1.000000e+00 : f32
    %128 = vector.broadcast %cst_43 : f32 to vector<8x128xf32>
    %129 = arith.addf %128, %127 : vector<8x128xf32>
    %130 = arith.divf %128, %129 : vector<8x128xf32>
    %131 = vector.extract_strided_slice %118 {offsets = [0, 256], sizes = [8, 128], strides = [1, 1]} : vector<8x512xf32> to vector<8x128xf32>
    %132 = math.tanh %131 : vector<8x128xf32>
    %133 = vector.extract_strided_slice %118 {offsets = [0, 384], sizes = [8, 128], strides = [1, 1]} : vector<8x512xf32> to vector<8x128xf32>
    %134 = arith.negf %133 : vector<8x128xf32>
    %135 = math.exp %134 : vector<8x128xf32>
    %cst_44 = arith.constant 1.000000e+00 : f32
    %136 = vector.broadcast %cst_44 : f32 to vector<8x128xf32>
    %137 = arith.addf %136, %135 : vector<8x128xf32>
    %138 = arith.divf %136, %137 : vector<8x128xf32>
    %139 = arith.mulf %130, %107 : vector<8x128xf32>
    %140 = arith.mulf %124, %132 : vector<8x128xf32>
    %141 = arith.addf %139, %140 : vector<8x128xf32>
    %142 = math.tanh %141 : vector<8x128xf32>
    %143 = arith.mulf %138, %142 : vector<8x128xf32>
    %144 = arith.index_cast %c3_i32 : i32 to index
    %c0_45 = arith.constant 0 : index
    %c0_46 = arith.constant 0 : index
    %145 = vector.load %arg13[%144, %c0_45, %c0_46] : memref<8x8x128xf32, #tpu.memory_space<vmem>>, vector<1x8x128xf32>
    %146 = vector.shape_cast %145 : vector<1x8x128xf32> to vector<8x128xf32>
    %147 = vector.shape_cast %143 : vector<8x128xf32> to vector<1x8x128xf32>
    tpu.vector_store %arg13[%144, %c0_45, %c0_46], %147 {strides = array<i32>} : memref<8x8x128xf32, #tpu.memory_space<vmem>>, vector<1x8x128xf32>,
    %c4_i32 = arith.constant 4 : i32
    %cst_47 = arith.constant dense<0.000000e+00> : vector<8x512xf32>
    %148 = tpu.matmul %143, %9, %cst_47 {dimension_numbers = #tpu.dot_dimension_numbers<[1], [0], [0], [1], [0, 0, 1, 1], [], []>} : vector<8x128xf32>, vector<128x512xf32>, vector<8x512xf32> -> vector<8x512xf32>
    %149 = arith.index_cast %c4_i32 : i32 to index
    %c0_48 = arith.constant 0 : index
    %c0_49 = arith.constant 0 : index
    %150 = vector.load %arg12[%149, %c0_48, %c0_49] : memref<8x8x512xf32, #tpu.memory_space<vmem>>, vector<1x8x512xf32>
    %151 = vector.shape_cast %150 : vector<1x8x512xf32> to vector<8x512xf32>
    %152 = arith.addf %148, %151 : vector<8x512xf32>
    %153 = vector.extract_strided_slice %152 {offsets = [0, 0], sizes = [8, 128], strides = [1, 1]} : vector<8x512xf32> to vector<8x128xf32>
    %154 = arith.negf %153 : vector<8x128xf32>
    %155 = math.exp %154 : vector<8x128xf32>
    %cst_50 = arith.constant 1.000000e+00 : f32
    %156 = vector.broadcast %cst_50 : f32 to vector<8x128xf32>
    %157 = arith.addf %156, %155 : vector<8x128xf32>
    %158 = arith.divf %156, %157 : vector<8x128xf32>
    %159 = vector.extract_strided_slice %152 {offsets = [0, 128], sizes = [8, 128], strides = [1, 1]} : vector<8x512xf32> to vector<8x128xf32>
    %160 = arith.negf %159 : vector<8x128xf32>
    %161 = math.exp %160 : vector<8x128xf32>
    %cst_51 = arith.constant 1.000000e+00 : f32
    %162 = vector.broadcast %cst_51 : f32 to vector<8x128xf32>
    %163 = arith.addf %162, %161 : vector<8x128xf32>
    %164 = arith.divf %162, %163 : vector<8x128xf32>
    %165 = vector.extract_strided_slice %152 {offsets = [0, 256], sizes = [8, 128], strides = [1, 1]} : vector<8x512xf32> to vector<8x128xf32>
    %166 = math.tanh %165 : vector<8x128xf32>
    %167 = vector.extract_strided_slice %152 {offsets = [0, 384], sizes = [8, 128], strides = [1, 1]} : vector<8x512xf32> to vector<8x128xf32>
    %168 = arith.negf %167 : vector<8x128xf32>
    %169 = math.exp %168 : vector<8x128xf32>
    %cst_52 = arith.constant 1.000000e+00 : f32
    %170 = vector.broadcast %cst_52 : f32 to vector<8x128xf32>
    %171 = arith.addf %170, %169 : vector<8x128xf32>
    %172 = arith.divf %170, %171 : vector<8x128xf32>
    %173 = arith.mulf %164, %141 : vector<8x128xf32>
    %174 = arith.mulf %158, %166 : vector<8x128xf32>
    %175 = arith.addf %173, %174 : vector<8x128xf32>
    %176 = math.tanh %175 : vector<8x128xf32>
    %177 = arith.mulf %172, %176 : vector<8x128xf32>
    %178 = arith.index_cast %c4_i32 : i32 to index
    %c0_53 = arith.constant 0 : index
    %c0_54 = arith.constant 0 : index
    %179 = vector.load %arg13[%178, %c0_53, %c0_54] : memref<8x8x128xf32, #tpu.memory_space<vmem>>, vector<1x8x128xf32>
    %180 = vector.shape_cast %179 : vector<1x8x128xf32> to vector<8x128xf32>
    %181 = vector.shape_cast %177 : vector<8x128xf32> to vector<1x8x128xf32>
    tpu.vector_store %arg13[%178, %c0_53, %c0_54], %181 {strides = array<i32>} : memref<8x8x128xf32, #tpu.memory_space<vmem>>, vector<1x8x128xf32>,
    %c5_i32 = arith.constant 5 : i32
    %cst_55 = arith.constant dense<0.000000e+00> : vector<8x512xf32>
    %182 = tpu.matmul %177, %9, %cst_55 {dimension_numbers = #tpu.dot_dimension_numbers<[1], [0], [0], [1], [0, 0, 1, 1], [], []>} : vector<8x128xf32>, vector<128x512xf32>, vector<8x512xf32> -> vector<8x512xf32>
    %183 = arith.index_cast %c5_i32 : i32 to index
    %c0_56 = arith.constant 0 : index
    %c0_57 = arith.constant 0 : index
    %184 = vector.load %arg12[%183, %c0_56, %c0_57] : memref<8x8x512xf32, #tpu.memory_space<vmem>>, vector<1x8x512xf32>
    %185 = vector.shape_cast %184 : vector<1x8x512xf32> to vector<8x512xf32>
    %186 = arith.addf %182, %185 : vector<8x512xf32>
    %187 = vector.extract_strided_slice %186 {offsets = [0, 0], sizes = [8, 128], strides = [1, 1]} : vector<8x512xf32> to vector<8x128xf32>
    %188 = arith.negf %187 : vector<8x128xf32>
    %189 = math.exp %188 : vector<8x128xf32>
    %cst_58 = arith.constant 1.000000e+00 : f32
    %190 = vector.broadcast %cst_58 : f32 to vector<8x128xf32>
    %191 = arith.addf %190, %189 : vector<8x128xf32>
    %192 = arith.divf %190, %191 : vector<8x128xf32>
    %193 = vector.extract_strided_slice %186 {offsets = [0, 128], sizes = [8, 128], strides = [1, 1]} : vector<8x512xf32> to vector<8x128xf32>
    %194 = arith.negf %193 : vector<8x128xf32>
    %195 = math.exp %194 : vector<8x128xf32>
    %cst_59 = arith.constant 1.000000e+00 : f32
    %196 = vector.broadcast %cst_59 : f32 to vector<8x128xf32>
    %197 = arith.addf %196, %195 : vector<8x128xf32>
    %198 = arith.divf %196, %197 : vector<8x128xf32>
    %199 = vector.extract_strided_slice %186 {offsets = [0, 256], sizes = [8, 128], strides = [1, 1]} : vector<8x512xf32> to vector<8x128xf32>
    %200 = math.tanh %199 : vector<8x128xf32>
    %201 = vector.extract_strided_slice %186 {offsets = [0, 384], sizes = [8, 128], strides = [1, 1]} : vector<8x512xf32> to vector<8x128xf32>
    %202 = arith.negf %201 : vector<8x128xf32>
    %203 = math.exp %202 : vector<8x128xf32>
    %cst_60 = arith.constant 1.000000e+00 : f32
    %204 = vector.broadcast %cst_60 : f32 to vector<8x128xf32>
    %205 = arith.addf %204, %203 : vector<8x128xf32>
    %206 = arith.divf %204, %205 : vector<8x128xf32>
    %207 = arith.mulf %198, %175 : vector<8x128xf32>
    %208 = arith.mulf %192, %200 : vector<8x128xf32>
    %209 = arith.addf %207, %208 : vector<8x128xf32>
    %210 = math.tanh %209 : vector<8x128xf32>
    %211 = arith.mulf %206, %210 : vector<8x128xf32>
    %212 = arith.index_cast %c5_i32 : i32 to index
    %c0_61 = arith.constant 0 : index
    %c0_62 = arith.constant 0 : index
    %213 = vector.load %arg13[%212, %c0_61, %c0_62] : memref<8x8x128xf32, #tpu.memory_space<vmem>>, vector<1x8x128xf32>
    %214 = vector.shape_cast %213 : vector<1x8x128xf32> to vector<8x128xf32>
    %215 = vector.shape_cast %211 : vector<8x128xf32> to vector<1x8x128xf32>
    tpu.vector_store %arg13[%212, %c0_61, %c0_62], %215 {strides = array<i32>} : memref<8x8x128xf32, #tpu.memory_space<vmem>>, vector<1x8x128xf32>,
    %c6_i32 = arith.constant 6 : i32
    %cst_63 = arith.constant dense<0.000000e+00> : vector<8x512xf32>
    %216 = tpu.matmul %211, %9, %cst_63 {dimension_numbers = #tpu.dot_dimension_numbers<[1], [0], [0], [1], [0, 0, 1, 1], [], []>} : vector<8x128xf32>, vector<128x512xf32>, vector<8x512xf32> -> vector<8x512xf32>
    %217 = arith.index_cast %c6_i32 : i32 to index
    %c0_64 = arith.constant 0 : index
    %c0_65 = arith.constant 0 : index
    %218 = vector.load %arg12[%217, %c0_64, %c0_65] : memref<8x8x512xf32, #tpu.memory_space<vmem>>, vector<1x8x512xf32>
    %219 = vector.shape_cast %218 : vector<1x8x512xf32> to vector<8x512xf32>
    %220 = arith.addf %216, %219 : vector<8x512xf32>
    %221 = vector.extract_strided_slice %220 {offsets = [0, 0], sizes = [8, 128], strides = [1, 1]} : vector<8x512xf32> to vector<8x128xf32>
    %222 = arith.negf %221 : vector<8x128xf32>
    %223 = math.exp %222 : vector<8x128xf32>
    %cst_66 = arith.constant 1.000000e+00 : f32
    %224 = vector.broadcast %cst_66 : f32 to vector<8x128xf32>
    %225 = arith.addf %224, %223 : vector<8x128xf32>
    %226 = arith.divf %224, %225 : vector<8x128xf32>
    %227 = vector.extract_strided_slice %220 {offsets = [0, 128], sizes = [8, 128], strides = [1, 1]} : vector<8x512xf32> to vector<8x128xf32>
    %228 = arith.negf %227 : vector<8x128xf32>
    %229 = math.exp %228 : vector<8x128xf32>
    %cst_67 = arith.constant 1.000000e+00 : f32
    %230 = vector.broadcast %cst_67 : f32 to vector<8x128xf32>
    %231 = arith.addf %230, %229 : vector<8x128xf32>
    %232 = arith.divf %230, %231 : vector<8x128xf32>
    %233 = vector.extract_strided_slice %220 {offsets = [0, 256], sizes = [8, 128], strides = [1, 1]} : vector<8x512xf32> to vector<8x128xf32>
    %234 = math.tanh %233 : vector<8x128xf32>
    %235 = vector.extract_strided_slice %220 {offsets = [0, 384], sizes = [8, 128], strides = [1, 1]} : vector<8x512xf32> to vector<8x128xf32>
    %236 = arith.negf %235 : vector<8x128xf32>
    %237 = math.exp %236 : vector<8x128xf32>
    %cst_68 = arith.constant 1.000000e+00 : f32
    %238 = vector.broadcast %cst_68 : f32 to vector<8x128xf32>
    %239 = arith.addf %238, %237 : vector<8x128xf32>
    %240 = arith.divf %238, %239 : vector<8x128xf32>
    %241 = arith.mulf %232, %209 : vector<8x128xf32>
    %242 = arith.mulf %226, %234 : vector<8x128xf32>
    %243 = arith.addf %241, %242 : vector<8x128xf32>
    %244 = math.tanh %243 : vector<8x128xf32>
    %245 = arith.mulf %240, %244 : vector<8x128xf32>
    %246 = arith.index_cast %c6_i32 : i32 to index
    %c0_69 = arith.constant 0 : index
    %c0_70 = arith.constant 0 : index
    %247 = vector.load %arg13[%246, %c0_69, %c0_70] : memref<8x8x128xf32, #tpu.memory_space<vmem>>, vector<1x8x128xf32>
    %248 = vector.shape_cast %247 : vector<1x8x128xf32> to vector<8x128xf32>
    %249 = vector.shape_cast %245 : vector<8x128xf32> to vector<1x8x128xf32>
    tpu.vector_store %arg13[%246, %c0_69, %c0_70], %249 {strides = array<i32>} : memref<8x8x128xf32, #tpu.memory_space<vmem>>, vector<1x8x128xf32>,
    %c7_i32 = arith.constant 7 : i32
    %cst_71 = arith.constant dense<0.000000e+00> : vector<8x512xf32>
    %250 = tpu.matmul %245, %9, %cst_71 {dimension_numbers = #tpu.dot_dimension_numbers<[1], [0], [0], [1], [0, 0, 1, 1], [], []>} : vector<8x128xf32>, vector<128x512xf32>, vector<8x512xf32> -> vector<8x512xf32>
    %251 = arith.index_cast %c7_i32 : i32 to index
    %c0_72 = arith.constant 0 : index
    %c0_73 = arith.constant 0 : index
    %252 = vector.load %arg12[%251, %c0_72, %c0_73] : memref<8x8x512xf32, #tpu.memory_space<vmem>>, vector<1x8x512xf32>
    %253 = vector.shape_cast %252 : vector<1x8x512xf32> to vector<8x512xf32>
    %254 = arith.addf %250, %253 : vector<8x512xf32>
    %255 = vector.extract_strided_slice %254 {offsets = [0, 0], sizes = [8, 128], strides = [1, 1]} : vector<8x512xf32> to vector<8x128xf32>
    %256 = arith.negf %255 : vector<8x128xf32>
    %257 = math.exp %256 : vector<8x128xf32>
    %cst_74 = arith.constant 1.000000e+00 : f32
    %258 = vector.broadcast %cst_74 : f32 to vector<8x128xf32>
    %259 = arith.addf %258, %257 : vector<8x128xf32>
    %260 = arith.divf %258, %259 : vector<8x128xf32>
    %261 = vector.extract_strided_slice %254 {offsets = [0, 128], sizes = [8, 128], strides = [1, 1]} : vector<8x512xf32> to vector<8x128xf32>
    %262 = arith.negf %261 : vector<8x128xf32>
    %263 = math.exp %262 : vector<8x128xf32>
    %cst_75 = arith.constant 1.000000e+00 : f32
    %264 = vector.broadcast %cst_75 : f32 to vector<8x128xf32>
    %265 = arith.addf %264, %263 : vector<8x128xf32>
    %266 = arith.divf %264, %265 : vector<8x128xf32>
    %267 = vector.extract_strided_slice %254 {offsets = [0, 256], sizes = [8, 128], strides = [1, 1]} : vector<8x512xf32> to vector<8x128xf32>
    %268 = math.tanh %267 : vector<8x128xf32>
    %269 = vector.extract_strided_slice %254 {offsets = [0, 384], sizes = [8, 128], strides = [1, 1]} : vector<8x512xf32> to vector<8x128xf32>
    %270 = arith.negf %269 : vector<8x128xf32>
    %271 = math.exp %270 : vector<8x128xf32>
    %cst_76 = arith.constant 1.000000e+00 : f32
    %272 = vector.broadcast %cst_76 : f32 to vector<8x128xf32>
    %273 = arith.addf %272, %271 : vector<8x128xf32>
    %274 = arith.divf %272, %273 : vector<8x128xf32>
    %275 = arith.mulf %266, %243 : vector<8x128xf32>
    %276 = arith.mulf %260, %268 : vector<8x128xf32>
    %277 = arith.addf %275, %276 : vector<8x128xf32>
    %278 = math.tanh %277 : vector<8x128xf32>
    %279 = arith.mulf %274, %278 : vector<8x128xf32>
    %280 = arith.index_cast %c7_i32 : i32 to index
    %c0_77 = arith.constant 0 : index
    %c0_78 = arith.constant 0 : index
    %281 = vector.load %arg13[%280, %c0_77, %c0_78] : memref<8x8x128xf32, #tpu.memory_space<vmem>>, vector<1x8x128xf32>
    %282 = vector.shape_cast %281 : vector<1x8x128xf32> to vector<8x128xf32>
    %283 = vector.shape_cast %279 : vector<8x128xf32> to vector<1x8x128xf32>
    tpu.vector_store %arg13[%280, %c0_77, %c0_78], %283 {strides = array<i32>} : memref<8x8x128xf32, #tpu.memory_space<vmem>>, vector<1x8x128xf32>,
    %c8_i32 = arith.constant 8 : i32
    %c0_79 = arith.constant 0 : index
    %c0_80 = arith.constant 0 : index
    %c0_81 = arith.constant 0 : index
    %284 = vector.load %arg13[%c0_79, %c0_80, %c0_81] : memref<8x8x128xf32, #tpu.memory_space<vmem>>, vector<8x8x128xf32>
    %285 = vector.shape_cast %284 : vector<8x8x128xf32> to vector<64x128xf32>
    %c0_82 = arith.constant 0 : index
    %c0_83 = arith.constant 0 : index
    %286 = vector.load %arg5[%c0_82, %c0_83] : memref<128x128xf32, #tpu.memory_space<vmem>>, vector<128x128xf32>
    %cst_84 = arith.constant dense<0.000000e+00> : vector<64x128xf32>
    %287 = tpu.matmul %285, %286, %cst_84 {dimension_numbers = #tpu.dot_dimension_numbers<[1], [0], [0], [1], [0, 0, 1, 1], [], []>} : vector<64x128xf32>, vector<128x128xf32>, vector<64x128xf32> -> vector<64x128xf32>
    %c0_85 = arith.constant 0 : index
    %c0_86 = arith.constant 0 : index
    %288 = vector.load %arg6[%c0_85, %c0_86] : memref<1x128xf32, #tpu.memory_space<vmem>>, vector<1x128xf32>
    %289 = vector.broadcast %288 : vector<1x128xf32> to vector<64x128xf32>
    %290 = arith.addf %287, %289 : vector<64x128xf32>
    %291 = vector.shape_cast %290 : vector<64x128xf32> to vector<8x8x128xf32>
    %c0_87 = arith.constant 0 : index
    %c0_88 = arith.constant 0 : index
    %c0_89 = arith.constant 0 : index
    %292 = vector.load %arg9[%c0_87, %c0_88, %c0_89] : memref<8x8x128xf32, #tpu.memory_space<vmem>>, vector<8x8x128xf32>
    tpu.vector_store %arg9[%c0_87, %c0_88, %c0_89], %291 {strides = array<i32>} : memref<8x8x128xf32, #tpu.memory_space<vmem>>, vector<8x8x128xf32>,
    %c0_90 = arith.constant 0 : index
    %c0_91 = arith.constant 0 : index
    %293 = vector.load %arg10[%c0_90, %c0_91] : memref<8x128xf32, #tpu.memory_space<vmem>>, vector<8x128xf32>
    tpu.vector_store %arg10[%c0_90, %c0_91], %279 {strides = array<i32>} : memref<8x128xf32, #tpu.memory_space<vmem>>, vector<8x128xf32>,
    %c0_92 = arith.constant 0 : index
    %c0_93 = arith.constant 0 : index
    %294 = vector.load %arg11[%c0_92, %c0_93] : memref<8x128xf32, #tpu.memory_space<vmem>>, vector<8x128xf32>
    tpu.vector_store %arg11[%c0_92, %c0_93], %277 {strides = array<i32>} : memref<8x128xf32, #tpu.memory_space<vmem>>, vector<8x128xf32>,
    return
  }
  func.func @transform_0(%arg0: i32) -> (i32, i32, i32) {
    %c0_i32 = arith.constant 0 : i32
    %c0_i32_0 = arith.constant 0 : i32
    %c0_i32_1 = arith.constant 0 : i32
    %c0_i32_2 = arith.constant 0 : i32
    return %c0_i32, %c0_i32_0, %c0_i32_1 : i32, i32, i32
  }
  func.func @transform_1(%arg0: i32) -> (i32, i32) {
    %c0_i32 = arith.constant 0 : i32
    %c0_i32_0 = arith.constant 0 : i32
    %c0_i32_1 = arith.constant 0 : i32
    return %c0_i32, %c0_i32_0 : i32, i32
  }
  func.func @transform_2(%arg0: i32) -> (i32, i32) {
    %c0_i32 = arith.constant 0 : i32
    %c0_i32_0 = arith.constant 0 : i32
    %c0_i32_1 = arith.constant 0 : i32
    return %c0_i32, %c0_i32_0 : i32, i32
  }
  func.func @transform_3(%arg0: i32) -> (i32, i32) {
    %c0_i32 = arith.constant 0 : i32
    %c0_i32_0 = arith.constant 0 : i32
    %c0_i32_1 = arith.constant 0 : i32
    return %c0_i32, %c0_i32_0 : i32, i32
  }
  func.func @transform_4(%arg0: i32) -> (i32, i32) {
    %c0_i32 = arith.constant 0 : i32
    %c0_i32_0 = arith.constant 0 : i32
    %c0_i32_1 = arith.constant 0 : i32
    return %c0_i32, %c0_i32_0 : i32, i32
  }
  func.func @transform_5(%arg0: i32) -> (i32, i32) {
    %c0_i32 = arith.constant 0 : i32
    %c0_i32_0 = arith.constant 0 : i32
    %c0_i32_1 = arith.constant 0 : i32
    return %c0_i32, %c0_i32_0 : i32, i32
  }
  func.func @transform_6(%arg0: i32) -> (i32, i32) {
    %c0_i32 = arith.constant 0 : i32
    %c0_i32_0 = arith.constant 0 : i32
    %c0_i32_1 = arith.constant 0 : i32
    return %c0_i32, %c0_i32_0 : i32, i32
  }
  func.func @transform_7(%arg0: i32) -> (i32, i32) {
    %c0_i32 = arith.constant 0 : i32
    %c0_i32_0 = arith.constant 0 : i32
    %c0_i32_1 = arith.constant 0 : i32
    return %c0_i32, %c0_i32_0 : i32, i32
  }
  func.func @transform_8(%arg0: i32) -> (i32, i32, i32) {
    %c0_i32 = arith.constant 0 : i32
    %c0_i32_0 = arith.constant 0 : i32
    %c0_i32_1 = arith.constant 0 : i32
    %c0_i32_2 = arith.constant 0 : i32
    return %c0_i32, %c0_i32_0, %c0_i32_1 : i32, i32, i32
  }
  func.func @transform_9(%arg0: i32) -> (i32, i32) {
    %c0_i32 = arith.constant 0 : i32
    %c0_i32_0 = arith.constant 0 : i32
    %c0_i32_1 = arith.constant 0 : i32
    return %c0_i32, %c0_i32_0 : i32, i32
  }
  func.func @transform_10(%arg0: i32) -> (i32, i32) {
    %c0_i32 = arith.constant 0 : i32
    %c0_i32_0 = arith.constant 0 : i32
    %c0_i32_1 = arith.constant 0 : i32
    return %c0_i32, %c0_i32_0 : i32, i32
  }
}

</mosaic_0001>

<bundles_post_ra>
// kernel: tpu_custom_call.1
= control target key start
LH: loop header
LB: loop body
LE: loop exit
PB: predicated region body
PF: predicated region fallthrough
CT: control target
= control target key end

     0   :  { %16 = vsyncpa [#allocation5], 0  ;;  %s3821_s0 = inlined_call_operand.hbm [shape: f32[8,8,32], index: 0, kind: input, shape index: {}]   ;;  %s3822_s1 = inlined_call_operand.hbm [shape: f32[32,512], index: 1, kind: input, shape index: {}]   ;;  %s3823_s2 = inlined_call_operand.hbm [shape: f32[128,512], index: 2, kind: input, shape index: {}]   ;;  %s3824_s3 = inlined_call_operand.hbm [shape: f32[1,512], index: 3, kind: input, shape index: {}]   ;;  %s3825_s4 = inlined_call_operand.hbm [shape: f32[128,128], index: 4, kind: input, shape index: {}]   ;;  %s3826_s5 = inlined_call_operand.vmem [shape: f32[1,128], index: 5, kind: input, shape index: {}]   ;;  %s3827_s6 = inlined_call_operand.vmem [shape: f32[8,128], index: 6, kind: input, shape index: {}]   ;;  %s3828_s7 = inlined_call_operand.vmem [shape: f32[8,128], index: 7, kind: input, shape index: {}]   ;;  %s3829_s8 = inlined_call_operand.hbm [shape: f32[8,8,128], index: 8, kind: output, shape index: {0}]   ;;  %s3830_s9 = inlined_call_operand.hbm [shape: f32[8,128], index: 9, kind: output, shape index: {1}]   ;;  %s3831_s10 = inlined_call_operand.hbm [shape: f32[8,128], index: 10, kind: output, shape index: {2}]  }
   0x1   :  { %17 = vsyncpa [#allocation8], 0 }
   0x2   :  { %18 = vsyncpa [#allocation11], 0 }
   0x3   :  { %19 = vsyncpa [#allocation6], 0 }
   0x4   :  { %20 = vsyncpa [#allocation15], 0  ;;  %s3129_s13 = smov [#allocation7]   ;;  %s2943_s17 = scalar_lea.hbm %s3822_s1, 2048 }
   0x5   :  { %s38_s14 = sshll.u32 %s3129_s13, 4  ;;  %p2944_p0 = scmp.ne.s32.totalorder %s3822_s1, %s2943_s17  ;;  %s39_s14 = int_to_ptr.vmem [resolvable:$true] %s38_s14 }
   0x6   :  { %p2947_p1 = scmp.lt.u32.totalorder %s2943_s17, %s3822_s1 }
   0x8   :  { %p2949_p2 = pnand %p2947_p1, %p2944_p0 }
   0xa   :  { %2952 = shalt.err (!%p2949_p2)
}
   0xb   :  { %s2953_s22 = scalar_lea.vmem %s39_s14, 2048  ;;  %p2958_p4 = scmp.lt.s32.totalorder %s39_s14, %s39_s14 }
   0xc   :  { %p2954_p3 = scmp.ne.s32.totalorder %s39_s14, %s2953_s22  ;;  %p2959_p5 = scmp.lt.s32.totalorder %s2953_s22, %s2953_s22 }
   0xe   :  { %p2960_p6 = por %p2959_p5, %p2958_p4 }
  0x10   :  { %p2961_p7 = pnand %p2960_p6, %p2954_p3 }
  0x12   :  { %2964 = shalt.err (!%p2961_p7)
}
  0x13   :  { %s3130_s23 = smov 512   ;;  %s3131_s24 = smov 32  }
  0x14   :  { %44 = dma.hbm_to_vmem [thread:$0]  %s3822_s1, 2048, %s39_s14, [#allocation8], %s3130_s23, %s3130_s23, %s3131_s24  }
  0x15   :  { %s3132_s27 = smov [#allocation10]   ;;  %s3133_s29 = smov [#allocation4]  }
  0x16   :  { %s63_s28 = sshll.u32 %s3132_s27, 4  ;;  %s26_s30 = sshll.u32 %s3133_s29, 4  ;;  %s64_s28 = int_to_ptr.vmem [resolvable:$true] %s63_s28  ;;  %s27_s30 = int_to_ptr.vmem [resolvable:$true] %s26_s30 }
  0x17   :  { %s2965_s13 = scalar_lea.hbm %s3824_s3, 64 }
  0x18   :  { %p2966_p8 = scmp.ne.s32.totalorder %s3824_s3, %s2965_s13  ;;  %p2969_p9 = scmp.lt.u32.totalorder %s2965_s13, %s3824_s3 }
  0x1a   :  { %p2971_p10 = pnand %p2969_p9, %p2966_p8 }
  0x1c   :  { %2974 = shalt.err (!%p2971_p10)
}
  0x1d   :  { %s2975_s1 = scalar_lea.vmem %s64_s28, 64  ;;  %p2980_p12 = scmp.lt.s32.totalorder %s64_s28, %s64_s28 }
  0x1e   :  { %p2976_p11 = scmp.ne.s32.totalorder %s64_s28, %s2975_s1  ;;  %p2981_p13 = scmp.lt.s32.totalorder %s2975_s1, %s2975_s1 }
  0x20   :  { %p2982_p0 = por %p2981_p13, %p2980_p12 }
  0x22   :  { %p2983_p1 = pnand %p2982_p0, %p2976_p11 }
  0x24   :  { %2986 = shalt.err (!%p2983_p1)
}
  0x25   :  { %66 = dma.hbm_to_vmem [thread:$0]  %s3824_s3, 64, %s64_s28, [#allocation11]  }
  0x26   :  { %s2987_s22 = scalar_lea.hbm %s3821_s0, 1024 }
  0x27   :  { %p2988_p2 = scmp.ne.s32.totalorder %s3821_s0, %s2987_s22  ;;  %p2991_p3 = scmp.lt.u32.totalorder %s2987_s22, %s3821_s0 }
  0x29   :  { %p2993_p4 = pnand %p2991_p3, %p2988_p2 }
  0x2b   :  { %2996 = shalt.err (!%p2993_p4)
}
  0x2c   :  { %s2997_s11 = scalar_lea.vmem %s27_s30, 1024  ;;  %p3002_p6 = scmp.lt.s32.totalorder %s27_s30, %s27_s30 }
  0x2d   :  { %p2998_p5 = scmp.ne.s32.totalorder %s27_s30, %s2997_s11  ;;  %p3003_p7 = scmp.lt.s32.totalorder %s2997_s11, %s2997_s11 }
  0x2f   :  { %p3004_p8 = por %p3003_p7, %p3002_p6 }
  0x31   :  { %p3005_p9 = pnand %p3004_p8, %p2998_p5 }
  0x33   :  { %3008 = shalt.err (!%p3005_p9)
}
  0x34   :  { %s3134_s3 = smov 128   ;;  %s3135_s28 = smov 8  }
  0x35   :  { %32 = dma.hbm_to_vmem [thread:$0]  %s3821_s0, 1024, %s27_s30, [#allocation5], %s3134_s3, %s3134_s3, %s3135_s28  }
  0x36   :  { %s3136_s15 = smov [#allocation9]   ;;  %s3137_s17 = smov [#allocation12]  }
  0x37   :  { %s50_s16 = sshll.u32 %s3136_s15, 4  ;;  %s72_s18 = sshll.u32 %s3137_s17, 4  ;;  %s51_s16 = int_to_ptr.vmem [resolvable:$true] %s50_s16  ;;  %s73_s18 = int_to_ptr.vmem [resolvable:$true] %s72_s18 }
  0x38   :  { %s3009_s19 = scalar_lea.hbm %s3823_s2, 8192 }
  0x39   :  { %p3010_p10 = scmp.ne.s32.totalorder %s3823_s2, %s3009_s19  ;;  %p3013_p11 = scmp.lt.u32.totalorder %s3009_s19, %s3823_s2 }
  0x3b   :  { %p3015_p12 = pnand %p3013_p11, %p3010_p10 }
  0x3d   :  { %3018 = shalt.err (!%p3015_p12)
}
  0x3e   :  { %s3019_s0 = scalar_lea.vmem %s51_s16, 8192  ;;  %p3024_p0 = scmp.lt.s32.totalorder %s51_s16, %s51_s16 }
  0x3f   :  { %p3020_p13 = scmp.ne.s32.totalorder %s51_s16, %s3019_s0  ;;  %p3025_p1 = scmp.lt.s32.totalorder %s3019_s0, %s3019_s0 }
  0x41   :  { %p3026_p2 = por %p3025_p1, %p3024_p0 }
  0x43   :  { %p3027_p3 = pnand %p3026_p2, %p3020_p13 }
  0x45   :  { %3030 = shalt.err (!%p3027_p3)
}
  0x46   :  { %56 = dma.hbm_to_vmem [thread:$0]  %s3823_s2, 8192, %s51_s16, [#allocation8], %s3130_s23, %s3130_s23, %s3131_s24  }
  0x47   :  { %s3031_s11 = scalar_lea.hbm %s3825_s4, 2048 }
  0x48   :  { %p3032_p4 = scmp.ne.s32.totalorder %s3825_s4, %s3031_s11  ;;  %p3035_p5 = scmp.lt.u32.totalorder %s3031_s11, %s3825_s4 }
  0x4a   :  { %p3037_p6 = pnand %p3035_p5, %p3032_p4 }
  0x4c   :  { %3040 = shalt.err (!%p3037_p6)
}
  0x4d   :  { %s3041_s1 = scalar_lea.vmem %s73_s18, 2048  ;;  %p3046_p8 = scmp.lt.s32.totalorder %s73_s18, %s73_s18 }
  0x4e   :  { %p3042_p7 = scmp.ne.s32.totalorder %s73_s18, %s3041_s1  ;;  %p3047_p9 = scmp.lt.s32.totalorder %s3041_s1, %s3041_s1 }
  0x50   :  { %p3048_p10 = por %p3047_p9, %p3046_p8 }
  0x52   :  { %p3049_p11 = pnand %p3048_p10, %p3042_p7 }
  0x54   :  { %3052 = shalt.err (!%p3049_p11)
}
  0x55   :  { %78 = dma.hbm_to_vmem [thread:$0]  %s3825_s4, 2048, %s73_s18, [#allocation11], %s3134_s3, %s3134_s3, %s3135_s28  }
  0x56   :  { %3119 = dma.done.wait [#allocation5], 1024  }
  0x57   :  { %3120 = vsyncadd [#allocation5], 4294966272 }
  0x58   :  { %3121 = dma.done.wait [#allocation8], 10240  }
  0x59   :  { %3122 = vsyncadd [#allocation8], 4294957056 }
  0x5a   :  { %3123 = dma.done.wait [#allocation11], 2112  }
  0x5b   :  { %3124 = vsyncadd [#allocation11], 4294965184  ;;  %v3138_v0 = vmov 0.0   ;;  %v111_v1 = vld [vmem:[#allocation7 + $0x18] sm:$0xff]  ;;  %v110_v3 = vld [vmem:[#allocation7 + $0x10] sm:$0xff]  ;;  %vm146_vm0 = vcmask 261120  }
  0x5c   :  { %348 = vmatprep.mubr.f32.mxu1 %v3138_v0  ;;  %235 = vmatprep.mubr.f32.mxu0 %v3138_v0  ;;  %v115_v2 = vld [vmem:[#allocation7 + $0x38] sm:$0xff]  ;;  %v114_v5 = vld [vmem:[#allocation7 + $0x30] sm:$0xff]  ;;  %v430_v12 = vld [vmem:[#allocation9 + $0x8] sm:$0xff] }
  0x5d   :  { %v2186_v4 = vpack.c.bf16 %v115_v2, %v111_v1  ;;  %v119_v6 = vld [vmem:[#allocation7 + $0x58] sm:$0xff]  ;;  %v2188_v8 = vpack.c.bf16 %v114_v5, %v110_v3  ;;  %v118_v10 = vld [vmem:[#allocation7 + $0x50] sm:$0xff]  ;;  %v434_v13 = vld [vmem:[#allocation9 + $0x28] sm:$0xff] }
  0x5e   :  { %v123_v7 = vld [vmem:[#allocation7 + $0x78] sm:$0xff]  ;;  %v122_v11 = vld [vmem:[#allocation7 + $0x70] sm:$0xff]  ;;  %v3271_v15 = vpack.c.bf16 %v434_v13, %v430_v12  ;;  %v429_v16 = vld [vmem:[#allocation9] sm:$0xff] }
  0x5f   :  { %v2190_v9 = vpack.c.bf16 %v123_v7, %v119_v6  ;;  %2187 = vmatprep.subr.bf16.mxu1 %v2186_v4  ;;  %v2192_v14 = vpack.c.bf16 %v122_v11, %v118_v10  ;;  %v433_v17 = vld [vmem:[#allocation9 + $0x20] sm:$0xff]  ;;  %v438_v18 = vld [vmem:[#allocation9 + $0x48] sm:$0xff]  ;;  %v3293_v40 = vld [vmem:[#allocation4 + $0x10] sm:$0xff] }
  0x60   :  { %2189 = vmatpush1.bf16.msra.mxu1 %v2188_v8  ;;  %v442_v19 = vld [vmem:[#allocation9 + $0x68] sm:$0xff]  ;;  %v3273_v20 = vld [vmem:[#allocation4] sm:$0xff]  ;;  %v3275_v21 = vpack.c.bf16 %v433_v17, %v429_v16  ;;  %v3306_v53 = vld [vmem:[#allocation4 + $0x18] sm:$0xff] }
  0x61   :  { %2191 = vmatprep.subr.bf16.mxu1 %v2190_v9  ;;  %v3278_v22 = vpack.c.bf16 %v442_v19, %v438_v18  ;;  %v437_v23 = vld [vmem:[#allocation9 + $0x40] sm:$0xff]  ;;  %v446_v25 = vld [vmem:[#allocation9 + $0x88] sm:$0xff]  ;;  %v106_v11 = vld [vmem:[#allocation4 + $0x30] sm:$0xff] }
  0x62   :  { %v441_v24 = vld [vmem:[#allocation9 + $0x60] sm:$0xff]  ;;  %v450_v26 = vld [vmem:[#allocation9 + $0xa8] sm:$0xff]  ;;  %v432_v17 = vld [vmem:[#allocation9 + $0x18] sm:$0xff] }
  0x63   :  { %v3282_v27 = vld [vmem:[#allocation4 + $0x8] sm:$0xff]  ;;  %v3286_v28 = vpack.c.bf16 %v441_v24, %v437_v23  ;;  %v445_v29 = vld [vmem:[#allocation9 + $0x80] sm:$0xff]  ;;  %v3289_v32 = vpack.c.bf16 %v450_v26, %v446_v25  ;;  %v436_v18 = vld [vmem:[#allocation9 + $0x38] sm:$0xff] }
  0x64   :  { %2193 = vmatpush1.bf16.msra.mxu1 %v2192_v14  ;;  %v449_v30 = vld [vmem:[#allocation9 + $0xa0] sm:$0xff]  ;;  %v109_v31 = vld [vmem:[#allocation7 + $0x8] sm:$0xff]  ;;  %v107_v19 = vld [vmem:[#allocation4 + $0x38] sm:$0xff]  ;;  %v3366_v23 = vpack.c.bf16 %v436_v18, %v432_v17 }
  0x65   :  { %2195 = vmatprep.subr.bf16.mxu1 %v3271_v15  ;;  %v113_v33 = vld [vmem:[#allocation7 + $0x28] sm:$0xff]  ;;  %v108_v34 = vld [vmem:[#allocation7] sm:$0xff]  ;;  %v3297_v42 = vpack.c.bf16 %v449_v30, %v445_v29  ;;  %v431_v24 = vld [vmem:[#allocation9 + $0x10] sm:$0xff] }
  0x66   :  { %v112_v35 = vld [vmem:[#allocation7 + $0x20] sm:$0xff]  ;;  %v454_v36 = vld [vmem:[#allocation9 + $0xc8] sm:$0xff]  ;;  %v2178_v38 = vpack.c.bf16 %v113_v33, %v109_v31  ;;  %v435_v25 = vld [vmem:[#allocation9 + $0x30] sm:$0xff] }
  0x67   :  { %2077 = vmatmul.mubr.msk.f32.vlgmr.msra.gmra.mrb[0].mxu1 %vm146_vm0, %v3273_v20  ;;  %v458_v37 = vld [vmem:[#allocation9 + $0xe8] sm:$0xff]  ;;  %v2180_v39 = vpack.c.bf16 %v112_v35, %v108_v34  ;;  %v116_v44 = vld [vmem:[#allocation7 + $0x40] sm:$0xff]  ;;  %v440_v26 = vld [vmem:[#allocation9 + $0x58] sm:$0xff]  ;;  %v3381_v30 = vpack.c.bf16 %v435_v25, %v431_v24  ;;  %v126_v24 = vlaneseq }
  0x68   :  { %2197 = vmatpush1.bf16.msra.mxu1 %v3275_v21  ;;  %354 = vmatprep.mubr.f32.mxu1 %v3138_v0  ;;  %v117_v41 = vld [vmem:[#allocation7 + $0x48] sm:$0xff]  ;;  %v120_v45 = vld [vmem:[#allocation7 + $0x60] sm:$0xff]  ;;  %v3300_v46 = vpack.c.bf16 %v458_v37, %v454_v36  ;;  %v439_v33 = vld [vmem:[#allocation9 + $0x50] sm:$0xff] }
  0x69   :  { %2199 = vmatprep.subr.bf16.mxu1 %v3278_v22  ;;  %v121_v43 = vld [vmem:[#allocation7 + $0x68] sm:$0xff]  ;;  %v453_v47 = vld [vmem:[#allocation9 + $0xc0] sm:$0xff]  ;;  %2179 = vmatprep.subr.bf16.mxu0 %v2178_v38  ;;  %v2184_v52 = vpack.c.bf16 %v120_v45, %v116_v44  ;;  %v443_v34 = vld [vmem:[#allocation9 + $0x70] sm:$0xff] }
  0x6a   :  { %v457_v48 = vld [vmem:[#allocation9 + $0xe0] sm:$0xff]  ;;  %v2182_v49 = vpack.c.bf16 %v121_v43, %v117_v41  ;;  %v462_v50 = vld [vmem:[#allocation9 + $0x108] sm:$0xff]  ;;  %2181 = vmatpush1.bf16.msra.mxu0 %v2180_v39  ;;  %v448_v35 = vld [vmem:[#allocation9 + $0x98] sm:$0xff]  ;;  %v3393_v37 = vpack.c.bf16 %v443_v34, %v439_v33 }
  0x6b   :  { %2078 = vmatmul.mubr.msk.f32.gmra.mrb[2].mxu1 %vm146_vm0, %v3282_v27  ;;  %v466_v51 = vld [vmem:[#allocation9 + $0x128] sm:$0xff]  ;;  %v3308_v54 = vpack.c.bf16 %v457_v48, %v453_v47  ;;  %v461_v56 = vld [vmem:[#allocation9 + $0x100] sm:$0xff]  ;;  %v452_v36 = vld [vmem:[#allocation9 + $0xb8] sm:$0xff] }
  0x6c   :  { %2201 = vmatpush1.bf16.msra.mxu1 %v3286_v28  ;;  %360 = vmatprep.mubr.f32.mxu1 %v3138_v0  ;;  %v3311_v55 = vpack.c.bf16 %v466_v51, %v462_v50  ;;  %v465_v57 = vld [vmem:[#allocation9 + $0x120] sm:$0xff]  ;;  %v470_v58 = vld [vmem:[#allocation9 + $0x148] sm:$0xff]  ;;  %v3397_v38 = vpack.c.bf16 %v452_v36, %v448_v35  ;;  %v447_v39 = vld [vmem:[#allocation9 + $0x90] sm:$0xff] }
  0x6d   :  { %2203 = vmatprep.subr.bf16.mxu1 %v3289_v32  ;;  %2183 = vmatprep.subr.bf16.mxu0 %v2182_v49  ;;  %v474_v59 = vld [vmem:[#allocation9 + $0x168] sm:$0xff]  ;;  %v3318_v60 = vld [vmem:[#allocation4 + $0x20] sm:$0xff]  ;;  %v3320_v61 = vpack.c.bf16 %v465_v57, %v461_v56  ;;  %v456_v41 = vld [vmem:[#allocation9 + $0xd8] sm:$0xff] }
  0x6e   :  { %2185 = vmatpush1.bf16.msra.mxu0 %v2184_v52  ;;  %v3323_v62 = vpack.c.bf16 %v474_v59, %v470_v58  ;;  %v469_v63 = vld [vmem:[#allocation9 + $0x140] sm:$0xff]  ;;  %v478_v2 = vld [vmem:[#allocation9 + $0x188] sm:$0xff]  ;;  %v460_v43 = vld [vmem:[#allocation9 + $0xf8] sm:$0xff] }
  0x6f   :  { %2079 = vmatmul.mubr.msk.f32.gmra.mrb[4].mxu1 %vm146_vm0, %v3293_v40  ;;  %2259 = vmatprep.subr.bf16.mxu0 %v3271_v15  ;;  %v473_v1 = vld [vmem:[#allocation9 + $0x160] sm:$0xff]  ;;  %v482_v3 = vld [vmem:[#allocation9 + $0x1a8] sm:$0xff]  ;;  %v3408_v45 = vpack.c.bf16 %v460_v43, %v456_v41  ;;  %v455_v47 = vld [vmem:[#allocation9 + $0xd0] sm:$0xff] }
  0x70   :  { %2205 = vmatpush1.bf16.msra.mxu1 %v3297_v42  ;;  %366 = vmatprep.mubr.f32.mxu1 %v3138_v0  ;;  %v3334_v4 = vld [vmem:[#allocation4 + $0x28] sm:$0xff]  ;;  %v3336_v5 = vpack.c.bf16 %v473_v1, %v469_v63  ;;  %v3339_v6 = vpack.c.bf16 %v482_v3, %v478_v2  ;;  %v477_v7 = vld [vmem:[#allocation9 + $0x180] sm:$0xff]  ;;  %v459_v48 = vld [vmem:[#allocation9 + $0xf0] sm:$0xff] }
  0x71   :  { %2207 = vmatprep.subr.bf16.mxu1 %v3300_v46  ;;  %2069 = vmatmul.mubr.msk.f32.vlgmr.msra.gmra.mrb[0].mxu0 %vm146_vm0, %v3273_v20  ;;  %v481_v8 = vld [vmem:[#allocation9 + $0x1a0] sm:$0xff]  ;;  %v486_v9 = vld [vmem:[#allocation9 + $0x1c8] sm:$0xff]  ;;  %v464_v49 = vld [vmem:[#allocation9 + $0x118] sm:$0xff]  ;;  %v3415_v51 = vpack.c.bf16 %v459_v48, %v455_v47 }
  0x72   :  { %2261 = vmatpush1.bf16.msra.mxu0 %v3275_v21  ;;  %241 = vmatprep.mubr.f32.mxu0 %v3138_v0  ;;  %v490_v10 = vld [vmem:[#allocation9 + $0x1e8] sm:$0xff]  ;;  %v3350_v12 = vpack.c.bf16 %v481_v8, %v477_v7  ;;  %v485_v14 = vld [vmem:[#allocation9 + $0x1c0] sm:$0xff]  ;;  %v468_v50 = vld [vmem:[#allocation9 + $0x138] sm:$0xff] }
  0x73   :  { %2080 = vmatmul.mubr.msk.f32.gmra.mrb[6].mxu1 %vm146_vm0, %v3306_v53  ;;  %2263 = vmatprep.subr.bf16.mxu0 %v3278_v22  ;;  %v3353_v13 = vpack.c.bf16 %v490_v10, %v486_v9  ;;  %v489_v16 = vld [vmem:[#allocation9 + $0x1e0] sm:$0xff]  ;;  %v3418_v52 = vpack.c.bf16 %v468_v50, %v464_v49  ;;  %v467_v56 = vld [vmem:[#allocation9 + $0x130] sm:$0xff]  ;;  %v472_v57 = vld [vmem:[#allocation9 + $0x158] sm:$0xff] }
  0x74   :  { %2209 = vmatpush1.bf16.msra.mxu1 %v3308_v54  ;;  %372 = vmatprep.mubr.f32.mxu1 %v3138_v0  ;;  %v3363_v20 = vpack.c.bf16 %v489_v16, %v485_v14  ;;  %v3379_v29 = vld [vmem:[%s3827_s6] sm:$0xff]  ;;  %v476_v58 = vld [vmem:[#allocation9 + $0x178] sm:$0xff]  ;;  %v471_v63 = vld [vmem:[#allocation9 + $0x150] sm:$0xff] }
  0x75   :  { %2211 = vmatprep.subr.bf16.mxu1 %v3311_v55  ;;  %2070 = vmatmul.mubr.msk.f32.gmra.mrb[2].mxu0 %vm146_vm0, %v3282_v27  ;;  %v444_v27 = vld [vmem:[#allocation9 + $0x78] sm:$0xff]  ;;  %v475_v1 = vld [vmem:[#allocation9 + $0x170] sm:$0xff]  ;;  %v124_v33 = vld [vmem:[#allocation10] sm:$0xf] }
  0x76   :  { %2265 = vmatpush1.bf16.msra.mxu0 %v3286_v28  ;;  %247 = vmatprep.mubr.f32.mxu0 %v3138_v0  ;;  %v3384_v31 = vpack.c.bf16 %v444_v27, %v440_v26  ;;  %v480_v2 = vld [vmem:[#allocation9 + $0x198] sm:$0xff]  ;;  %v479_v8 = vld [vmem:[#allocation9 + $0x190] sm:$0xff]  ;;  %v127_v27 = vshrl.u32 %v126_v24, 7  ;;  %v494_v24 = vld [vmem:[%s3828_s7] sm:$0xff] }
  0x77   :  { %2081 = vmatmul.mubr.msk.f32.gmra.mrb[8].mxu1 %vm146_vm0, %v3318_v60  ;;  %2267 = vmatprep.subr.bf16.mxu0 %v3289_v32  ;;  %v484_v3 = vld [vmem:[#allocation9 + $0x1b8] sm:$0xff]  ;;  %v483_v9 = vld [vmem:[#allocation9 + $0x1b0] sm:$0xff] }
  0x78   :  { %2213 = vmatpush1.bf16.msra.mxu1 %v3320_v61  ;;  %378 = vmatprep.mubr.f32.mxu1 %v3138_v0  ;;  %v3434_v7 = vpack.c.bf16 %v484_v3, %v480_v2  ;;  %v488_v10 = vld [vmem:[#allocation9 + $0x1d8] sm:$0xff]  ;;  %v3437_v14 = vpack.c.bf16 %v483_v9, %v479_v8  ;;  %v487_v17 = vld [vmem:[#allocation9 + $0x1d0] sm:$0xff]  ;;  %v132_v34 = vsub.s32 1, %v127_v27 }
  0x79   :  { %2215 = vmatprep.subr.bf16.mxu1 %v3323_v62  ;;  %2071 = vmatmul.mubr.msk.f32.gmra.mrb[4].mxu0 %vm146_vm0, %v3293_v40  ;;  %v451_v40 = vld [vmem:[#allocation9 + $0xb0] sm:$0xff] }
  0x7a   :  { %2269 = vmatpush1.bf16.msra.mxu0 %v3297_v42  ;;  %253 = vmatprep.mubr.f32.mxu0 %v3138_v0  ;;  %v3405_v44 = vpack.c.bf16 %v451_v40, %v447_v39  ;;  %v491_v18 = vld [vmem:[#allocation9 + $0x1f0] sm:$0xff]  ;;  %v3468_v36 = vrot.slane %v124_v33, %v132_v34 }
  0x7b   :  { %2082 = vmatmul.mubr.msk.f32.gmra.mrb[10].mxu1 %vm146_vm0, %v3334_v4  ;;  %2271 = vmatprep.subr.bf16.mxu0 %v3300_v46 }
  0x7c   :  { %2217 = vmatpush1.bf16.msra.mxu1 %v3336_v5  ;;  %384 = vmatprep.mubr.f32.mxu1 %v3138_v0 }
  0x7d   :  { %2219 = vmatprep.subr.bf16.mxu1 %v3339_v6  ;;  %2072 = vmatmul.mubr.msk.f32.gmra.mrb[6].mxu0 %vm146_vm0, %v3306_v53  ;;  %v463_v53 = vld [vmem:[#allocation9 + $0x110] sm:$0xff] }
  0x7e   :  { %2273 = vmatpush1.bf16.msra.mxu0 %v3308_v54  ;;  %259 = vmatprep.mubr.f32.mxu0 %v3138_v0  ;;  %v3425_v59 = vpack.c.bf16 %v467_v56, %v463_v53  ;;  %v136_v53 = vsub.s32 2, %v127_v27 }
  0x7f   :  { %2083 = vmatmul.mubr.msk.f32.gmra.mrb[12].mxu1 %vm146_vm0, %v106_v11  ;;  %2275 = vmatprep.subr.bf16.mxu0 %v3311_v55 }
  0x80   :  { %2221 = vmatpush1.bf16.msra.mxu1 %v3350_v12  ;;  %390 = vmatprep.mubr.f32.mxu1 %v3138_v0 }
  0x81   :  { %2223 = vmatprep.subr.bf16.mxu1 %v3353_v13  ;;  %2073 = vmatmul.mubr.msk.f32.gmra.mrb[8].mxu0 %vm146_vm0, %v3318_v60  ;;  %v3428_v60 = vpack.c.bf16 %v476_v58, %v472_v57  ;;  %v140_v57 = vsub.s32 3, %v127_v27 }
  0x82   :  { %2277 = vmatpush1.bf16.msra.mxu0 %v3320_v61  ;;  %265 = vmatprep.mubr.f32.mxu0 %v3138_v0 }
  0x83   :  { %2084 = vmatmul.mubr.msk.f32.gmra.mrb[14].mxu1 %vm146_vm0, %v107_v19  ;;  %2279 = vmatprep.subr.bf16.mxu0 %v3323_v62  ;;  %v3474_v3 = vrot.slane %v124_v33, %v140_v57 }
  0x84   :  { %2225 = vmatpush1.bf16.msra.mxu1 %v3363_v20  ;;  %563 = vmatprep.mubr.f32.mxu1 %v3138_v0 }
  0x85   :  { %2227 = vmatprep.subr.bf16.mxu1 %v3366_v23  ;;  %2074 = vmatmul.mubr.msk.f32.gmra.mrb[10].mxu0 %vm146_vm0, %v3334_v4  ;;  %v3431_v4 = vpack.c.bf16 %v475_v1, %v471_v63  ;;  %v3472_v1 = vrot.slane %v124_v33, %v136_v53 }
  0x86   :  { %2281 = vmatpush1.bf16.msra.mxu0 %v3336_v5  ;;  %271 = vmatprep.mubr.f32.mxu0 %v3138_v0 }
  0x87   :  { %564 = vmatmul.mubr.f32.vlgmr.msra.gmra.mrb[16].mxu1 %v3379_v29  ;;  %2283 = vmatprep.subr.bf16.mxu0 %v3339_v6 }
  0x88   :  { %2229 = vmatpush1.bf16.msra.mxu1 %v3381_v30  ;;  %634 = vmatprep.mubr.f32.mxu1 %v3138_v0 }
  0x89   :  { %2231 = vmatprep.subr.bf16.mxu1 %v3384_v31  ;;  %2075 = vmatmul.mubr.msk.f32.gmra.mrb[12].mxu0 %vm146_vm0, %v106_v11  ;;  %v492_v11 = vld [vmem:[#allocation9 + $0x1f8] sm:$0xff] }
  0x8a   :  { %2285 = vmatpush1.bf16.msra.mxu0 %v3350_v12  ;;  %277 = vmatprep.mubr.f32.mxu0 %v3138_v0  ;;  %v3440_v16 = vpack.c.bf16 %v492_v11, %v488_v10 }
  0x8b   :  { %2287 = vmatprep.subr.bf16.mxu0 %v3353_v13 }
  0x8c   :  { %2233 = vmatpush1.bf16.msra.mxu1 %v3393_v37 }
  0x8d   :  { %2235 = vmatprep.subr.bf16.mxu1 %v3397_v38  ;;  %2076 = vmatmul.mubr.msk.f32.gmra.mrb[14].mxu0 %vm146_vm0, %v107_v19  ;;  %v3443_v19 = vpack.c.bf16 %v491_v18, %v487_v17 }
  0x8e   :  { %2289 = vmatpush1.bf16.msra.mxu0 %v3363_v20  ;;  %735 = vmatprep.mubr.f32.mxu0 %v3138_v0 }
  0x8f   :  { %2323 = vmatprep.subr.bf16.mxu0 %v3271_v15 }
  0x90   :  { %2237 = vmatpush1.bf16.msra.mxu1 %v3405_v44 }
  0x91   :  { %2239 = vmatprep.subr.bf16.mxu1 %v3408_v45 }
  0x94   :  { %2241 = vmatpush1.bf16.msra.mxu1 %v3415_v51 }
  0x95   :  { %2243 = vmatprep.subr.bf16.mxu1 %v3418_v52 }
  0x98   :  { %2245 = vmatpush1.bf16.msra.mxu1 %v3425_v59 }
  0x99   :  { %2247 = vmatprep.subr.bf16.mxu1 %v3428_v60 }
  0x9c   :  { %2249 = vmatpush1.bf16.msra.mxu1 %v3431_v4 }
  0x9d   :  { %2251 = vmatprep.subr.bf16.mxu1 %v3434_v7 }
  0xa0   :  { %2253 = vmatpush1.bf16.msra.mxu1 %v3437_v14 }
  0xa1   :  { %2255 = vmatprep.subr.bf16.mxu1 %v3440_v16 }
  0xa4   :  { %2257 = vmatpush1.bf16.msra.mxu1 %v3443_v19 }
  0xa5   :  { %2291 = vmatprep.subr.bf16.mxu1 %v3366_v23 }
  0xa7   :  { %635 = vmatmul.mubr.f32.vlgmr.msra.gmra.mrb[0].mxu1 %v3379_v29  ;;  %v128_v29 = vsub.s32 0, %v127_v27 }
  0xa8   :  { %2293 = vmatpush1.bf16.msra.mxu1 %v3381_v30  ;;  %806 = vmatprep.mubr.f32.mxu1 %v3138_v0 }
  0xa9   :  { %2295 = vmatprep.subr.bf16.mxu1 %v3384_v31  ;;  %v3466_v35 = vrot.slane %v124_v33, %v128_v29 }
  0xac   :  { %2297 = vmatpush1.bf16.msra.mxu1 %v3393_v37 }
  0xad   :  { %2299 = vmatprep.subr.bf16.mxu1 %v3397_v38 }
  0xb0   :  { %2301 = vmatpush1.bf16.msra.mxu1 %v3405_v44 }
  0xb1   :  { %2303 = vmatprep.subr.bf16.mxu1 %v3408_v45 }
  0xb4   :  { %2305 = vmatpush1.bf16.msra.mxu1 %v3415_v51 }
  0xb5   :  { %2307 = vmatprep.subr.bf16.mxu1 %v3418_v52 }
  0xb8   :  { %2309 = vmatpush1.bf16.msra.mxu1 %v3425_v59 }
  0xb9   :  { %2311 = vmatprep.subr.bf16.mxu1 %v3428_v60 }
  0xbc   :  { %2313 = vmatpush1.bf16.msra.mxu1 %v3431_v4 }
  0xbd   :  { %2315 = vmatprep.subr.bf16.mxu1 %v3434_v7 }
  0xc0   :  { %2317 = vmatpush1.bf16.msra.mxu1 %v3437_v14 }
  0xc1   :  { %2319 = vmatprep.subr.bf16.mxu1 %v3440_v16 }
  0xc4   :  { %2321 = vmatpush1.bf16.msra.mxu1 %v3443_v19 }
  0xc5   :  { %2355 = vmatprep.subr.bf16.mxu1 %v3366_v23 }
 0x144   :  { %v237_v25 = vpop.f32.mrb[0].mxu0 }
 0x145   :  { %v239_v26 = vpop.f32.mrb[1].mxu0  ;;  %v238_v39 = vadd.f32 %v237_v25, %v3466_v35 }
 0x146   :  { %v240_v40 = vadd.f32 %v239_v26, %v3468_v36 }
 0x15a   :  { %v565_v41 = vpop.f32.mrb[16].mxu1 }
 0x15b   :  { %v566_v43 = vadd.f32 %v565_v41, %v238_v39  ;;  %v567_v47 = vpop.f32.mrb[17].mxu1 }
 0x15c   :  { %v568_v48 = vadd.f32 %v567_v47, %v240_v40 }
 0x15d   :  { %v2085_v50 = vmul.f32 -1.442695, %v566_v43 }
 0x15e   :  { %v2086_v49 = vmul.f32 -1.442695, %v568_v48 }
 0x160   :  { %2815 = vpow2.f32 %v2086_v49 }
 0x161   :  { %2817 = vpow2.f32 %v2085_v50 }
 0x16a   :  { %v2816_v56 = vpop.eup %2815 }
 0x16b   :  { %v2818_v58 = vpop.eup %2817  ;;  %v650_v63 = vadd.f32 1.0, %v2816_v56 }
 0x16c   :  { %v644_v2 = vadd.f32 1.0, %v2818_v58 }
 0x16d   :  { %2819 = vrcp.f32 %v650_v63 }
 0x16e   :  { %2821 = vrcp.f32 %v644_v2 }
 0x177   :  { %v2820_v18 = vpop.eup %2819 }
 0x178   :  { %v2822_v25 = vpop.eup %2821  ;;  %v660_v27 = vmul.f32 %v2820_v18, %v494_v24 }
 0x17a   :  { %v636_v8 = vpop.f32.mrb[0].mxu1 }
 0x17b   :  { %v2756_v9 = vadd.f32 %v636_v8, %v3472_v1  ;;  %v638_v10 = vpop.f32.mrb[1].mxu1 }
 0x17c   :  { %v2757_v11 = vadd.f32 %v638_v10, %v3474_v3 }
 0x17d   :  { %2823 = vtanh.f32 %v2756_v9 }
 0x17e   :  { %v2087_v17 = vmul.f32 -1.442695, %v2757_v11 }
 0x180   :  { %2825 = vpow2.f32 %v2087_v17 }
 0x187   :  { %v2824_v26 = vpop.eup %2823 }
 0x188   :  { %v661_v29 = vmul.f32 %v2824_v26, %v2822_v25 }
 0x18a   :  { %v2826_v33 = vpop.eup %2825  ;;  %v3481_v34 = vadd.f32 %v661_v29, %v660_v27 }
 0x18b   :  { %v657_v39 = vadd.f32 1.0, %v2826_v33 }
 0x18c   :  { %2827 = vtanh.f32 %v3481_v34 }
 0x18d   :  { %2829 = vrcp.f32 %v657_v39 }
 0x196   :  { %v2828_v40 = vpop.eup %2827 }
 0x197   :  { %v2830_v41 = vpop.eup %2829 }
 0x198   :  { %v3484_v43 = vmul.f32 %v2830_v41, %v2828_v40 }
 0x19a   :  { %736 = vmatmul.mubr.f32.vlgmr.msra.gmra.mrb[2].mxu0 %v3484_v43  ;;  %807 = vmatmul.mubr.f32.vlgmr.msra.gmra.mrb[2].mxu1 %v3484_v43 }
 0x19b   :  { %2325 = vmatpush1.bf16.msra.mxu0 %v3275_v21  ;;  %2357 = vmatpush1.bf16.msra.mxu1 %v3381_v30 }
 0x19c   :  { %2327 = vmatprep.subr.bf16.mxu0 %v3278_v22  ;;  %2359 = vmatprep.subr.bf16.mxu1 %v3384_v31 }
 0x19d   :  { %908 = vmatprep.mubr.f32.mxu0 %v3138_v0  ;;  %979 = vmatprep.mubr.f32.mxu1 %v3138_v0 }
 0x19f   :  { %2329 = vmatpush1.bf16.msra.mxu0 %v3286_v28  ;;  %2361 = vmatpush1.bf16.msra.mxu1 %v3393_v37 }
 0x1a0   :  { %2331 = vmatprep.subr.bf16.mxu0 %v3289_v32  ;;  %2363 = vmatprep.subr.bf16.mxu1 %v3397_v38 }
 0x1a3   :  { %2333 = vmatpush1.bf16.msra.mxu0 %v3297_v42  ;;  %2365 = vmatpush1.bf16.msra.mxu1 %v3405_v44 }
 0x1a4   :  { %2335 = vmatprep.subr.bf16.mxu0 %v3300_v46  ;;  %2367 = vmatprep.subr.bf16.mxu1 %v3408_v45 }
 0x1a7   :  { %2337 = vmatpush1.bf16.msra.mxu0 %v3308_v54  ;;  %2369 = vmatpush1.bf16.msra.mxu1 %v3415_v51 }
 0x1a8   :  { %2339 = vmatprep.subr.bf16.mxu0 %v3311_v55  ;;  %2371 = vmatprep.subr.bf16.mxu1 %v3418_v52 }
 0x1ab   :  { %2341 = vmatpush1.bf16.msra.mxu0 %v3320_v61  ;;  %2373 = vmatpush1.bf16.msra.mxu1 %v3425_v59 }
 0x1ac   :  { %2343 = vmatprep.subr.bf16.mxu0 %v3323_v62  ;;  %2375 = vmatprep.subr.bf16.mxu1 %v3428_v60 }
 0x1af   :  { %2345 = vmatpush1.bf16.msra.mxu0 %v3336_v5  ;;  %2377 = vmatpush1.bf16.msra.mxu1 %v3431_v4 }
 0x1b0   :  { %2347 = vmatprep.subr.bf16.mxu0 %v3339_v6  ;;  %2379 = vmatprep.subr.bf16.mxu1 %v3434_v7 }
 0x1b3   :  { %2349 = vmatpush1.bf16.msra.mxu0 %v3350_v12  ;;  %2381 = vmatpush1.bf16.msra.mxu1 %v3437_v14 }
 0x1b4   :  { %2351 = vmatprep.subr.bf16.mxu0 %v3353_v13  ;;  %2383 = vmatprep.subr.bf16.mxu1 %v3440_v16 }
 0x1b7   :  { %2353 = vmatpush1.bf16.msra.mxu0 %v3363_v20  ;;  %2385 = vmatpush1.bf16.msra.mxu1 %v3443_v19 }
 0x1b8   :  { %2387 = vmatprep.subr.bf16.mxu0 %v3271_v15  ;;  %2419 = vmatprep.subr.bf16.mxu1 %v3366_v23 }
 0x26d   :  { %v737_v47 = vpop.f32.mrb[2].mxu0  ;;  %v808_v48 = vpop.f32.mrb[2].mxu1 }
 0x26e   :  { %v2742_v49 = vadd.f32 %v737_v47, %v3466_v35  ;;  %v739_v50 = vpop.f32.mrb[3].mxu0  ;;  %v810_v53 = vpop.f32.mrb[3].mxu1  ;;  %v2758_v8 = vadd.f32 %v808_v48, %v3472_v1 }
 0x26f   :  { %v2743_v56 = vadd.f32 %v739_v50, %v3468_v36  ;;  %v2759_v63 = vadd.f32 %v810_v53, %v3474_v3 }
 0x270   :  { %v2088_v57 = vmul.f32 -1.442695, %v2742_v49 }
 0x271   :  { %v2089_v58 = vmul.f32 -1.442695, %v2743_v56  ;;  %v2090_v2 = vmul.f32 -1.442695, %v2759_v63 }
 0x272   :  { %2831 = vpow2.f32 %v2088_v57 }
 0x273   :  { %2833 = vpow2.f32 %v2089_v58 }
 0x274   :  { %2835 = vpow2.f32 %v2090_v2 }
 0x275   :  { %2837 = vtanh.f32 %v2758_v8 }
 0x27c   :  { %v2832_v9 = vpop.eup %2831 }
 0x27d   :  { %v2834_v10 = vpop.eup %2833  ;;  %v816_v11 = vadd.f32 1.0, %v2832_v9 }
 0x27e   :  { %v822_v17 = vadd.f32 1.0, %v2834_v10  ;;  %v2836_v18 = vpop.eup %2835 }
 0x27f   :  { %2839 = vrcp.f32 %v816_v11  ;;  %v2838_v24 = vpop.eup %2837  ;;  %v829_v29 = vadd.f32 1.0, %v2836_v18 }
 0x280   :  { %2841 = vrcp.f32 %v822_v17 }
 0x281   :  { %2843 = vrcp.f32 %v829_v29 }
 0x289   :  { %v2840_v25 = vpop.eup %2839 }
 0x28a   :  { %v2842_v26 = vpop.eup %2841  ;;  %v833_v27 = vmul.f32 %v2840_v25, %v2838_v24 }
 0x28b   :  { %v832_v33 = vmul.f32 %v2842_v26, %v3481_v34  ;;  %v2844_v40 = vpop.eup %2843 }
 0x28d   :  { %v3527_v39 = vadd.f32 %v833_v27, %v832_v33 }
 0x28f   :  { %2845 = vtanh.f32 %v3527_v39 }
 0x299   :  { %v2846_v41 = vpop.eup %2845 }
 0x29a   :  { %v3530_v47 = vmul.f32 %v2846_v41, %v2844_v40 }
 0x29c   :  { %909 = vmatmul.mubr.f32.vlgmr.msra.gmra.mrb[4].mxu0 %v3530_v47  ;;  %980 = vmatmul.mubr.f32.vlgmr.msra.gmra.mrb[4].mxu1 %v3530_v47 }
 0x29d   :  { %2389 = vmatpush1.bf16.msra.mxu0 %v3275_v21  ;;  %2421 = vmatpush1.bf16.msra.mxu1 %v3381_v30 }
 0x29e   :  { %2391 = vmatprep.subr.bf16.mxu0 %v3278_v22  ;;  %2423 = vmatprep.subr.bf16.mxu1 %v3384_v31 }
 0x29f   :  { %1081 = vmatprep.mubr.f32.mxu0 %v3138_v0  ;;  %1152 = vmatprep.mubr.f32.mxu1 %v3138_v0 }
 0x2a1   :  { %2393 = vmatpush1.bf16.msra.mxu0 %v3286_v28  ;;  %2425 = vmatpush1.bf16.msra.mxu1 %v3393_v37 }
 0x2a2   :  { %2395 = vmatprep.subr.bf16.mxu0 %v3289_v32  ;;  %2427 = vmatprep.subr.bf16.mxu1 %v3397_v38 }
 0x2a5   :  { %2397 = vmatpush1.bf16.msra.mxu0 %v3297_v42  ;;  %2429 = vmatpush1.bf16.msra.mxu1 %v3405_v44 }
 0x2a6   :  { %2399 = vmatprep.subr.bf16.mxu0 %v3300_v46  ;;  %2431 = vmatprep.subr.bf16.mxu1 %v3408_v45 }
 0x2a9   :  { %2401 = vmatpush1.bf16.msra.mxu0 %v3308_v54  ;;  %2433 = vmatpush1.bf16.msra.mxu1 %v3415_v51 }
 0x2aa   :  { %2403 = vmatprep.subr.bf16.mxu0 %v3311_v55  ;;  %2435 = vmatprep.subr.bf16.mxu1 %v3418_v52 }
 0x2ad   :  { %2405 = vmatpush1.bf16.msra.mxu0 %v3320_v61  ;;  %2437 = vmatpush1.bf16.msra.mxu1 %v3425_v59 }
 0x2ae   :  { %2407 = vmatprep.subr.bf16.mxu0 %v3323_v62  ;;  %2439 = vmatprep.subr.bf16.mxu1 %v3428_v60 }
 0x2b1   :  { %2409 = vmatpush1.bf16.msra.mxu0 %v3336_v5  ;;  %2441 = vmatpush1.bf16.msra.mxu1 %v3431_v4 }
 0x2b2   :  { %2411 = vmatprep.subr.bf16.mxu0 %v3339_v6  ;;  %2443 = vmatprep.subr.bf16.mxu1 %v3434_v7 }
 0x2b5   :  { %2413 = vmatpush1.bf16.msra.mxu0 %v3350_v12  ;;  %2445 = vmatpush1.bf16.msra.mxu1 %v3437_v14 }
 0x2b6   :  { %2415 = vmatprep.subr.bf16.mxu0 %v3353_v13  ;;  %2447 = vmatprep.subr.bf16.mxu1 %v3440_v16 }
 0x2b9   :  { %2417 = vmatpush1.bf16.msra.mxu0 %v3363_v20  ;;  %2449 = vmatpush1.bf16.msra.mxu1 %v3443_v19 }
 0x2ba   :  { %2451 = vmatprep.subr.bf16.mxu0 %v3271_v15  ;;  %2483 = vmatprep.subr.bf16.mxu1 %v3366_v23 }
 0x36f   :  { %v910_v34 = vpop.f32.mrb[4].mxu0  ;;  %v981_v48 = vpop.f32.mrb[4].mxu1 }
 0x370   :  { %v2744_v49 = vadd.f32 %v910_v34, %v3466_v35  ;;  %v912_v50 = vpop.f32.mrb[5].mxu0  ;;  %v983_v53 = vpop.f32.mrb[5].mxu1  ;;  %v2760_v8 = vadd.f32 %v981_v48, %v3472_v1 }
 0x371   :  { %v2745_v56 = vadd.f32 %v912_v50, %v3468_v36  ;;  %v2761_v63 = vadd.f32 %v983_v53, %v3474_v3 }
 0x372   :  { %v2091_v57 = vmul.f32 -1.442695, %v2744_v49 }
 0x373   :  { %v2092_v58 = vmul.f32 -1.442695, %v2745_v56  ;;  %v2093_v2 = vmul.f32 -1.442695, %v2761_v63 }
 0x374   :  { %2847 = vpow2.f32 %v2091_v57 }
 0x375   :  { %2849 = vpow2.f32 %v2092_v58 }
 0x376   :  { %2851 = vpow2.f32 %v2093_v2 }
 0x377   :  { %2853 = vtanh.f32 %v2760_v8 }
 0x37e   :  { %v2848_v9 = vpop.eup %2847 }
 0x37f   :  { %v2850_v10 = vpop.eup %2849  ;;  %v989_v11 = vadd.f32 1.0, %v2848_v9 }
 0x380   :  { %v995_v17 = vadd.f32 1.0, %v2850_v10  ;;  %v2852_v18 = vpop.eup %2851 }
 0x381   :  { %2855 = vrcp.f32 %v989_v11  ;;  %v2854_v24 = vpop.eup %2853  ;;  %v1002_v29 = vadd.f32 1.0, %v2852_v18 }
 0x382   :  { %2857 = vrcp.f32 %v995_v17 }
 0x383   :  { %2859 = vrcp.f32 %v1002_v29 }
 0x38b   :  { %v2856_v25 = vpop.eup %2855 }
 0x38c   :  { %v2858_v26 = vpop.eup %2857  ;;  %v1006_v27 = vmul.f32 %v2856_v25, %v2854_v24 }
 0x38d   :  { %v1005_v33 = vmul.f32 %v2858_v26, %v3527_v39  ;;  %v2860_v41 = vpop.eup %2859 }
 0x38f   :  { %v3573_v40 = vadd.f32 %v1006_v27, %v1005_v33 }
 0x391   :  { %2861 = vtanh.f32 %v3573_v40 }
 0x39b   :  { %v2862_v34 = vpop.eup %2861 }
 0x39c   :  { %v3576_v48 = vmul.f32 %v2862_v34, %v2860_v41 }
 0x39e   :  { %1082 = vmatmul.mubr.f32.vlgmr.msra.gmra.mrb[6].mxu0 %v3576_v48  ;;  %1153 = vmatmul.mubr.f32.vlgmr.msra.gmra.mrb[6].mxu1 %v3576_v48 }
 0x39f   :  { %2453 = vmatpush1.bf16.msra.mxu0 %v3275_v21  ;;  %2485 = vmatpush1.bf16.msra.mxu1 %v3381_v30 }
 0x3a0   :  { %2455 = vmatprep.subr.bf16.mxu0 %v3278_v22  ;;  %2487 = vmatprep.subr.bf16.mxu1 %v3384_v31 }
 0x3a1   :  { %1254 = vmatprep.mubr.f32.mxu0 %v3138_v0  ;;  %1325 = vmatprep.mubr.f32.mxu1 %v3138_v0 }
 0x3a3   :  { %2457 = vmatpush1.bf16.msra.mxu0 %v3286_v28  ;;  %2489 = vmatpush1.bf16.msra.mxu1 %v3393_v37 }
 0x3a4   :  { %2459 = vmatprep.subr.bf16.mxu0 %v3289_v32  ;;  %2491 = vmatprep.subr.bf16.mxu1 %v3397_v38 }
 0x3a7   :  { %2461 = vmatpush1.bf16.msra.mxu0 %v3297_v42  ;;  %2493 = vmatpush1.bf16.msra.mxu1 %v3405_v44 }
 0x3a8   :  { %2463 = vmatprep.subr.bf16.mxu0 %v3300_v46  ;;  %2495 = vmatprep.subr.bf16.mxu1 %v3408_v45 }
 0x3ab   :  { %2465 = vmatpush1.bf16.msra.mxu0 %v3308_v54  ;;  %2497 = vmatpush1.bf16.msra.mxu1 %v3415_v51 }
 0x3ac   :  { %2467 = vmatprep.subr.bf16.mxu0 %v3311_v55  ;;  %2499 = vmatprep.subr.bf16.mxu1 %v3418_v52 }
 0x3af   :  { %2469 = vmatpush1.bf16.msra.mxu0 %v3320_v61  ;;  %2501 = vmatpush1.bf16.msra.mxu1 %v3425_v59 }
 0x3b0   :  { %2471 = vmatprep.subr.bf16.mxu0 %v3323_v62  ;;  %2503 = vmatprep.subr.bf16.mxu1 %v3428_v60 }
 0x3b3   :  { %2473 = vmatpush1.bf16.msra.mxu0 %v3336_v5  ;;  %2505 = vmatpush1.bf16.msra.mxu1 %v3431_v4 }
 0x3b4   :  { %2475 = vmatprep.subr.bf16.mxu0 %v3339_v6  ;;  %2507 = vmatprep.subr.bf16.mxu1 %v3434_v7 }
 0x3b7   :  { %2477 = vmatpush1.bf16.msra.mxu0 %v3350_v12  ;;  %2509 = vmatpush1.bf16.msra.mxu1 %v3437_v14 }
 0x3b8   :  { %2479 = vmatprep.subr.bf16.mxu0 %v3353_v13  ;;  %2511 = vmatprep.subr.bf16.mxu1 %v3440_v16 }
 0x3bb   :  { %2481 = vmatpush1.bf16.msra.mxu0 %v3363_v20  ;;  %2513 = vmatpush1.bf16.msra.mxu1 %v3443_v19 }
 0x3bc   :  { %2515 = vmatprep.subr.bf16.mxu0 %v3271_v15  ;;  %2547 = vmatprep.subr.bf16.mxu1 %v3366_v23 }
 0x471   :  { %v1083_v39 = vpop.f32.mrb[6].mxu0  ;;  %v1154_v49 = vpop.f32.mrb[6].mxu1 }
 0x472   :  { %v2746_v50 = vadd.f32 %v1083_v39, %v3466_v35  ;;  %v1085_v53 = vpop.f32.mrb[7].mxu0  ;;  %v1156_v56 = vpop.f32.mrb[7].mxu1  ;;  %v2762_v9 = vadd.f32 %v1154_v49, %v3472_v1 }
 0x473   :  { %v2747_v57 = vadd.f32 %v1085_v53, %v3468_v36  ;;  %v2763_v2 = vadd.f32 %v1156_v56, %v3474_v3 }
 0x474   :  { %v2094_v58 = vmul.f32 -1.442695, %v2746_v50 }
 0x475   :  { %v2095_v63 = vmul.f32 -1.442695, %v2747_v57  ;;  %v2096_v8 = vmul.f32 -1.442695, %v2763_v2 }
 0x476   :  { %2863 = vpow2.f32 %v2094_v58 }
 0x477   :  { %2865 = vpow2.f32 %v2095_v63 }
 0x478   :  { %2867 = vpow2.f32 %v2096_v8 }
 0x479   :  { %2869 = vtanh.f32 %v2762_v9 }
 0x480   :  { %v2864_v10 = vpop.eup %2863 }
 0x481   :  { %v2866_v11 = vpop.eup %2865  ;;  %v1162_v17 = vadd.f32 1.0, %v2864_v10 }
 0x482   :  { %v1168_v18 = vadd.f32 1.0, %v2866_v11  ;;  %v2868_v24 = vpop.eup %2867 }
 0x483   :  { %2871 = vrcp.f32 %v1162_v17  ;;  %v2870_v25 = vpop.eup %2869  ;;  %v1175_v33 = vadd.f32 1.0, %v2868_v24 }
 0x484   :  { %2873 = vrcp.f32 %v1168_v18 }
 0x485   :  { %2875 = vrcp.f32 %v1175_v33 }
 0x48d   :  { %v2872_v26 = vpop.eup %2871 }
 0x48e   :  { %v2874_v27 = vpop.eup %2873  ;;  %v1179_v29 = vmul.f32 %v2872_v26, %v2870_v25 }
 0x48f   :  { %v1178_v41 = vmul.f32 %v2874_v27, %v3573_v40  ;;  %v2876_v39 = vpop.eup %2875 }
 0x491   :  { %v3619_v34 = vadd.f32 %v1179_v29, %v1178_v41 }
 0x493   :  { %2877 = vtanh.f32 %v3619_v34 }
 0x49d   :  { %v2878_v49 = vpop.eup %2877 }
 0x49e   :  { %v3622_v50 = vmul.f32 %v2878_v49, %v2876_v39 }
 0x4a0   :  { %1255 = vmatmul.mubr.f32.vlgmr.msra.gmra.mrb[8].mxu0 %v3622_v50  ;;  %1326 = vmatmul.mubr.f32.vlgmr.msra.gmra.mrb[8].mxu1 %v3622_v50 }
 0x4a1   :  { %2517 = vmatpush1.bf16.msra.mxu0 %v3275_v21  ;;  %2549 = vmatpush1.bf16.msra.mxu1 %v3381_v30 }
 0x4a2   :  { %2519 = vmatprep.subr.bf16.mxu0 %v3278_v22  ;;  %2551 = vmatprep.subr.bf16.mxu1 %v3384_v31 }
 0x4a3   :  { %1427 = vmatprep.mubr.f32.mxu0 %v3138_v0  ;;  %1498 = vmatprep.mubr.f32.mxu1 %v3138_v0 }
 0x4a5   :  { %2521 = vmatpush1.bf16.msra.mxu0 %v3286_v28  ;;  %2553 = vmatpush1.bf16.msra.mxu1 %v3393_v37 }
 0x4a6   :  { %2523 = vmatprep.subr.bf16.mxu0 %v3289_v32  ;;  %2555 = vmatprep.subr.bf16.mxu1 %v3397_v38 }
 0x4a9   :  { %2525 = vmatpush1.bf16.msra.mxu0 %v3297_v42  ;;  %2557 = vmatpush1.bf16.msra.mxu1 %v3405_v44 }
 0x4aa   :  { %2527 = vmatprep.subr.bf16.mxu0 %v3300_v46  ;;  %2559 = vmatprep.subr.bf16.mxu1 %v3408_v45 }
 0x4ad   :  { %2529 = vmatpush1.bf16.msra.mxu0 %v3308_v54  ;;  %2561 = vmatpush1.bf16.msra.mxu1 %v3415_v51 }
 0x4ae   :  { %2531 = vmatprep.subr.bf16.mxu0 %v3311_v55  ;;  %2563 = vmatprep.subr.bf16.mxu1 %v3418_v52 }
 0x4b1   :  { %2533 = vmatpush1.bf16.msra.mxu0 %v3320_v61  ;;  %2565 = vmatpush1.bf16.msra.mxu1 %v3425_v59 }
 0x4b2   :  { %2535 = vmatprep.subr.bf16.mxu0 %v3323_v62  ;;  %2567 = vmatprep.subr.bf16.mxu1 %v3428_v60 }
 0x4b5   :  { %2537 = vmatpush1.bf16.msra.mxu0 %v3336_v5  ;;  %2569 = vmatpush1.bf16.msra.mxu1 %v3431_v4 }
 0x4b6   :  { %2539 = vmatprep.subr.bf16.mxu0 %v3339_v6  ;;  %2571 = vmatprep.subr.bf16.mxu1 %v3434_v7 }
 0x4b9   :  { %2541 = vmatpush1.bf16.msra.mxu0 %v3350_v12  ;;  %2573 = vmatpush1.bf16.msra.mxu1 %v3437_v14 }
 0x4ba   :  { %2543 = vmatprep.subr.bf16.mxu0 %v3353_v13  ;;  %2575 = vmatprep.subr.bf16.mxu1 %v3440_v16 }
 0x4bd   :  { %2545 = vmatpush1.bf16.msra.mxu0 %v3363_v20  ;;  %2577 = vmatpush1.bf16.msra.mxu1 %v3443_v19 }
 0x4be   :  { %2579 = vmatprep.subr.bf16.mxu0 %v3271_v15  ;;  %2611 = vmatprep.subr.bf16.mxu1 %v3366_v23 }
 0x573   :  { %v1256_v40 = vpop.f32.mrb[8].mxu0  ;;  %v1327_v53 = vpop.f32.mrb[8].mxu1 }
 0x574   :  { %v2748_v56 = vadd.f32 %v1256_v40, %v3466_v35  ;;  %v1258_v57 = vpop.f32.mrb[9].mxu0  ;;  %v1329_v58 = vpop.f32.mrb[9].mxu1  ;;  %v2764_v11 = vadd.f32 %v1327_v53, %v3472_v1 }
 0x575   :  { %v2749_v63 = vadd.f32 %v1258_v57, %v3468_v36  ;;  %v2765_v9 = vadd.f32 %v1329_v58, %v3474_v3 }
 0x576   :  { %v2097_v2 = vmul.f32 -1.442695, %v2748_v56 }
 0x577   :  { %v2098_v8 = vmul.f32 -1.442695, %v2749_v63  ;;  %v2099_v10 = vmul.f32 -1.442695, %v2765_v9 }
 0x578   :  { %2879 = vpow2.f32 %v2097_v2 }
 0x579   :  { %2881 = vpow2.f32 %v2098_v8 }
 0x57a   :  { %2883 = vpow2.f32 %v2099_v10 }
 0x57b   :  { %2885 = vtanh.f32 %v2764_v11 }
 0x582   :  { %v2880_v17 = vpop.eup %2879 }
 0x583   :  { %v2882_v18 = vpop.eup %2881  ;;  %v1335_v24 = vadd.f32 1.0, %v2880_v17 }
 0x584   :  { %v1341_v25 = vadd.f32 1.0, %v2882_v18  ;;  %v2884_v26 = vpop.eup %2883 }
 0x585   :  { %2887 = vrcp.f32 %v1335_v24  ;;  %v2886_v27 = vpop.eup %2885  ;;  %v1348_v39 = vadd.f32 1.0, %v2884_v26 }
 0x586   :  { %2889 = vrcp.f32 %v1341_v25 }
 0x587   :  { %2891 = vrcp.f32 %v1348_v39 }
 0x58f   :  { %v2888_v29 = vpop.eup %2887 }
 0x590   :  { %v2890_v33 = vpop.eup %2889  ;;  %v1352_v41 = vmul.f32 %v2888_v29, %v2886_v27 }
 0x591   :  { %v1351_v49 = vmul.f32 %v2890_v33, %v3619_v34  ;;  %v2892_v53 = vpop.eup %2891 }
 0x593   :  { %v3665_v40 = vadd.f32 %v1352_v41, %v1351_v49 }
 0x595   :  { %2893 = vtanh.f32 %v3665_v40 }
 0x59f   :  { %v2894_v56 = vpop.eup %2893 }
 0x5a0   :  { %v3668_v57 = vmul.f32 %v2894_v56, %v2892_v53 }
 0x5a2   :  { %1428 = vmatmul.mubr.f32.vlgmr.msra.gmra.mrb[10].mxu0 %v3668_v57  ;;  %1499 = vmatmul.mubr.f32.vlgmr.msra.gmra.mrb[10].mxu1 %v3668_v57 }
 0x5a3   :  { %2581 = vmatpush1.bf16.msra.mxu0 %v3275_v21  ;;  %2613 = vmatpush1.bf16.msra.mxu1 %v3381_v30 }
 0x5a4   :  { %2583 = vmatprep.subr.bf16.mxu0 %v3278_v22  ;;  %2615 = vmatprep.subr.bf16.mxu1 %v3384_v31 }
 0x5a5   :  { %1600 = vmatprep.mubr.f32.mxu0 %v3138_v0  ;;  %1671 = vmatprep.mubr.f32.mxu1 %v3138_v0 }
 0x5a7   :  { %2585 = vmatpush1.bf16.msra.mxu0 %v3286_v28  ;;  %2617 = vmatpush1.bf16.msra.mxu1 %v3393_v37 }
 0x5a8   :  { %2587 = vmatprep.subr.bf16.mxu0 %v3289_v32  ;;  %2619 = vmatprep.subr.bf16.mxu1 %v3397_v38 }
 0x5ab   :  { %2589 = vmatpush1.bf16.msra.mxu0 %v3297_v42  ;;  %2621 = vmatpush1.bf16.msra.mxu1 %v3405_v44 }
 0x5ac   :  { %2591 = vmatprep.subr.bf16.mxu0 %v3300_v46  ;;  %2623 = vmatprep.subr.bf16.mxu1 %v3408_v45 }
 0x5af   :  { %2593 = vmatpush1.bf16.msra.mxu0 %v3308_v54  ;;  %2625 = vmatpush1.bf16.msra.mxu1 %v3415_v51 }
 0x5b0   :  { %2595 = vmatprep.subr.bf16.mxu0 %v3311_v55  ;;  %2627 = vmatprep.subr.bf16.mxu1 %v3418_v52 }
 0x5b3   :  { %2597 = vmatpush1.bf16.msra.mxu0 %v3320_v61  ;;  %2629 = vmatpush1.bf16.msra.mxu1 %v3425_v59 }
 0x5b4   :  { %2599 = vmatprep.subr.bf16.mxu0 %v3323_v62  ;;  %2631 = vmatprep.subr.bf16.mxu1 %v3428_v60 }
 0x5b7   :  { %2601 = vmatpush1.bf16.msra.mxu0 %v3336_v5  ;;  %2633 = vmatpush1.bf16.msra.mxu1 %v3431_v4 }
 0x5b8   :  { %2603 = vmatprep.subr.bf16.mxu0 %v3339_v6  ;;  %2635 = vmatprep.subr.bf16.mxu1 %v3434_v7 }
 0x5bb   :  { %2605 = vmatpush1.bf16.msra.mxu0 %v3350_v12  ;;  %2637 = vmatpush1.bf16.msra.mxu1 %v3437_v14 }
 0x5bc   :  { %2607 = vmatprep.subr.bf16.mxu0 %v3353_v13  ;;  %2639 = vmatprep.subr.bf16.mxu1 %v3440_v16 }
 0x5bf   :  { %2609 = vmatpush1.bf16.msra.mxu0 %v3363_v20  ;;  %2641 = vmatpush1.bf16.msra.mxu1 %v3443_v19 }
 0x5c0   :  { %2643 = vmatprep.subr.bf16.mxu0 %v3271_v15  ;;  %2675 = vmatprep.subr.bf16.mxu1 %v3366_v23 }
 0x675   :  { %v1429_v34 = vpop.f32.mrb[10].mxu0  ;;  %v1500_v58 = vpop.f32.mrb[10].mxu1 }
 0x676   :  { %v2750_v63 = vadd.f32 %v1429_v34, %v3466_v35  ;;  %v1431_v2 = vpop.f32.mrb[11].mxu0  ;;  %v1502_v8 = vpop.f32.mrb[11].mxu1  ;;  %v2766_v24 = vadd.f32 %v1500_v58, %v3472_v1 }
 0x677   :  { %v2751_v9 = vadd.f32 %v1431_v2, %v3468_v36  ;;  %v2767_v17 = vadd.f32 %v1502_v8, %v3474_v3  ;;  %v1889_v2 = vld [vmem:[#allocation12 + $0x20] sm:$0xff]  ;;  %v1890_v8 = vld [vmem:[#allocation12 + $0x28] sm:$0xff] }
 0x678   :  { %v2100_v10 = vmul.f32 -1.442695, %v2750_v63 }
 0x679   :  { %v2101_v11 = vmul.f32 -1.442695, %v2751_v9  ;;  %v2102_v18 = vmul.f32 -1.442695, %v2767_v17  ;;  %v2714_v9 = vpack.c.bf16 %v1890_v8, %v1889_v2 }
 0x67a   :  { %2895 = vpow2.f32 %v2100_v10  ;;  %v1891_v10 = vld [vmem:[#allocation12 + $0x30] sm:$0xff] }
 0x67b   :  { %2897 = vpow2.f32 %v2101_v11  ;;  %v1892_v11 = vld [vmem:[#allocation12 + $0x38] sm:$0xff] }
 0x67c   :  { %2899 = vpow2.f32 %v2102_v18  ;;  %v2718_v17 = vpack.c.bf16 %v1892_v11, %v1891_v10  ;;  %v1893_v18 = vld [vmem:[#allocation12 + $0x40] sm:$0xff] }
 0x67d   :  { %2901 = vtanh.f32 %v2766_v24  ;;  %v1894_v24 = vld [vmem:[#allocation12 + $0x48] sm:$0xff] }
 0x684   :  { %v2896_v15 = vpop.eup %2895 }
 0x685   :  { %v2898_v25 = vpop.eup %2897  ;;  %v1508_v23 = vadd.f32 1.0, %v2896_v15  ;;  %v2722_v15 = vpack.c.bf16 %v1894_v24, %v1893_v18 }
 0x686   :  { %v1514_v26 = vadd.f32 1.0, %v2898_v25  ;;  %v2900_v27 = vpop.eup %2899  ;;  %v1895_v25 = vld [vmem:[#allocation12 + $0x50] sm:$0xff] }
 0x687   :  { %2903 = vrcp.f32 %v1508_v23  ;;  %v2902_v29 = vpop.eup %2901  ;;  %v1521_v49 = vadd.f32 1.0, %v2900_v27  ;;  %v1896_v23 = vld [vmem:[#allocation12 + $0x58] sm:$0xff]  ;;  %v1897_v27 = vld [vmem:[#allocation12 + $0x60] sm:$0xff] }
 0x688   :  { %2905 = vrcp.f32 %v1514_v26  ;;  %v2726_v26 = vpack.c.bf16 %v1896_v23, %v1895_v25 }
 0x689   :  { %2907 = vrcp.f32 %v1521_v49 }
 0x691   :  { %v2904_v33 = vpop.eup %2903 }
 0x692   :  { %v2906_v41 = vpop.eup %2905  ;;  %v1525_v39 = vmul.f32 %v2904_v33, %v2902_v29  ;;  %v1898_v29 = vld [vmem:[#allocation12 + $0x68] sm:$0xff]  ;;  %v1899_v33 = vld [vmem:[#allocation12 + $0x70] sm:$0xff] }
 0x693   :  { %v1524_v53 = vmul.f32 %v2906_v41, %v3665_v40  ;;  %v2908_v34 = vpop.eup %2907  ;;  %v1900_v41 = vld [vmem:[#allocation12 + $0x78] sm:$0xff] }
 0x695   :  { %v3711_v56 = vadd.f32 %v1525_v39, %v1524_v53  ;;  %v2734_v39 = vpack.c.bf16 %v1900_v41, %v1899_v33 }
 0x697   :  { %2909 = vtanh.f32 %v3711_v56 }
 0x6a1   :  { %v2910_v58 = vpop.eup %2909 }
 0x6a2   :  { %v3714_v63 = vmul.f32 %v2910_v58, %v2908_v34 }
 0x6a4   :  { %1601 = vmatmul.mubr.f32.vlgmr.msra.gmra.mrb[12].mxu0 %v3714_v63  ;;  %1672 = vmatmul.mubr.f32.vlgmr.msra.gmra.mrb[12].mxu1 %v3714_v63 }
 0x6a5   :  { %2645 = vmatpush1.bf16.msra.mxu0 %v3275_v21  ;;  %2677 = vmatpush1.bf16.msra.mxu1 %v3381_v30  ;;  %v1886_v21 = vld [vmem:[#allocation12 + $0x8] sm:$0xff] }
 0x6a6   :  { %2647 = vmatprep.subr.bf16.mxu0 %v3278_v22  ;;  %2679 = vmatprep.subr.bf16.mxu1 %v3384_v31 }
 0x6a7   :  { %1773 = vmatprep.mubr.f32.mxu0 %v3138_v0  ;;  %1844 = vmatprep.mubr.f32.mxu1 %v3138_v0  ;;  %v1885_v0 = vld [vmem:[#allocation12] sm:$0xff] }
 0x6a8   :  { %v2706_v22 = vpack.c.bf16 %v1886_v21, %v1885_v0 }
 0x6a9   :  { %2649 = vmatpush1.bf16.msra.mxu0 %v3286_v28  ;;  %2681 = vmatpush1.bf16.msra.mxu1 %v3393_v37 }
 0x6aa   :  { %2651 = vmatprep.subr.bf16.mxu0 %v3289_v32  ;;  %2683 = vmatprep.subr.bf16.mxu1 %v3397_v38 }
 0x6ad   :  { %2653 = vmatpush1.bf16.msra.mxu0 %v3297_v42  ;;  %2685 = vmatpush1.bf16.msra.mxu1 %v3405_v44 }
 0x6ae   :  { %2655 = vmatprep.subr.bf16.mxu0 %v3300_v46  ;;  %2687 = vmatprep.subr.bf16.mxu1 %v3408_v45 }
 0x6b1   :  { %2657 = vmatpush1.bf16.msra.mxu0 %v3308_v54  ;;  %2689 = vmatpush1.bf16.msra.mxu1 %v3415_v51 }
 0x6b2   :  { %2659 = vmatprep.subr.bf16.mxu0 %v3311_v55  ;;  %2691 = vmatprep.subr.bf16.mxu1 %v3418_v52 }
 0x6b5   :  { %2661 = vmatpush1.bf16.msra.mxu0 %v3320_v61  ;;  %2693 = vmatpush1.bf16.msra.mxu1 %v3425_v59 }
 0x6b6   :  { %2663 = vmatprep.subr.bf16.mxu0 %v3323_v62  ;;  %2695 = vmatprep.subr.bf16.mxu1 %v3428_v60 }
 0x6b9   :  { %2665 = vmatpush1.bf16.msra.mxu0 %v3336_v5  ;;  %2697 = vmatpush1.bf16.msra.mxu1 %v3431_v4  ;;  %v1887_v4 = vld [vmem:[#allocation12 + $0x10] sm:$0xff] }
 0x6ba   :  { %2667 = vmatprep.subr.bf16.mxu0 %v3339_v6  ;;  %2699 = vmatprep.subr.bf16.mxu1 %v3434_v7  ;;  %v1888_v7 = vld [vmem:[#allocation12 + $0x18] sm:$0xff] }
 0x6bb   :  { %v2710_v40 = vpack.c.bf16 %v1888_v7, %v1887_v4 }
 0x6bd   :  { %2669 = vmatpush1.bf16.msra.mxu0 %v3350_v12  ;;  %2701 = vmatpush1.bf16.msra.mxu1 %v3437_v14 }
 0x6be   :  { %2671 = vmatprep.subr.bf16.mxu0 %v3353_v13  ;;  %2703 = vmatprep.subr.bf16.mxu1 %v3440_v16 }
 0x6c1   :  { %2673 = vmatpush1.bf16.msra.mxu0 %v3363_v20  ;;  %2705 = vmatpush1.bf16.msra.mxu1 %v3443_v19 }
 0x6c2   :  { %2707 = vmatprep.subr.bf16.mxu0 %v2706_v22 }
 0x777   :  { %v1602_v28 = vpop.f32.mrb[12].mxu0  ;;  %v1673_v32 = vpop.f32.mrb[12].mxu1 }
 0x778   :  { %v2752_v42 = vadd.f32 %v1602_v28, %v3466_v35  ;;  %v1604_v46 = vpop.f32.mrb[13].mxu0  ;;  %v1675_v54 = vpop.f32.mrb[13].mxu1  ;;  %v2768_v12 = vadd.f32 %v1673_v32, %v3472_v1 }
 0x779   :  { %v2753_v55 = vadd.f32 %v1604_v46, %v3468_v36  ;;  %v2769_v5 = vadd.f32 %v1675_v54, %v3474_v3 }
 0x77a   :  { %v2103_v61 = vmul.f32 -1.442695, %v2752_v42 }
 0x77b   :  { %v2104_v62 = vmul.f32 -1.442695, %v2753_v55  ;;  %v2105_v6 = vmul.f32 -1.442695, %v2769_v5 }
 0x77c   :  { %2911 = vpow2.f32 %v2103_v61 }
 0x77d   :  { %2913 = vpow2.f32 %v2104_v62 }
 0x77e   :  { %2915 = vpow2.f32 %v2105_v6 }
 0x77f   :  { %2917 = vtanh.f32 %v2768_v12 }
 0x786   :  { %v2912_v13 = vpop.eup %2911 }
 0x787   :  { %v2914_v20 = vpop.eup %2913  ;;  %v1681_v30 = vadd.f32 1.0, %v2912_v13 }
 0x788   :  { %v1687_v31 = vadd.f32 1.0, %v2914_v20  ;;  %v2916_v37 = vpop.eup %2915 }
 0x789   :  { %2919 = vrcp.f32 %v1681_v30  ;;  %v2918_v38 = vpop.eup %2917  ;;  %v1694_v52 = vadd.f32 1.0, %v2916_v37 }
 0x78a   :  { %2921 = vrcp.f32 %v1687_v31 }
 0x78b   :  { %2923 = vrcp.f32 %v1694_v52 }
 0x793   :  { %v2920_v44 = vpop.eup %2919 }
 0x794   :  { %v2922_v45 = vpop.eup %2921  ;;  %v1698_v51 = vmul.f32 %v2920_v44, %v2918_v38 }
 0x795   :  { %v1697_v59 = vmul.f32 %v2922_v45, %v3711_v56  ;;  %v2924_v14 = vpop.eup %2923 }
 0x797   :  { %v3755_v60 = vadd.f32 %v1698_v51, %v1697_v59 }
 0x799   :  { %2925 = vtanh.f32 %v3755_v60 }
 0x7a3   :  { %v2926_v16 = vpop.eup %2925 }
 0x7a4   :  { %v1701_v19 = vmul.f32 %v2926_v16, %v2924_v14 }
 0x7a6   :  { %1774 = vmatmul.mubr.f32.vlgmr.msra.gmra.mrb[14].mxu0 %v1701_v19  ;;  %1845 = vmatmul.mubr.f32.vlgmr.msra.gmra.mrb[14].mxu1 %v1701_v19 }
 0x7a7   :  { %2709 = vmatpush3.bf16.msra.mxu0 %v2706_v22  ;;  %2166 = vmatprep.mubr.f32.mxu0 %v3484_v43  ;;  %v2730_v43 = vpack.c.bf16 %v1898_v29, %v1897_v27 }
 0x7a8   :  { %2711 = vmatprep.subr.bf16.mxu0 %v2710_v40 }
 0x7ab   :  { %2713 = vmatpush3.bf16.msra.mxu0 %v2710_v40 }
 0x7ac   :  { %2715 = vmatprep.subr.bf16.mxu0 %v2714_v9 }
 0x7af   :  { %2717 = vmatpush3.bf16.msra.mxu0 %v2714_v9 }
 0x7b0   :  { %2719 = vmatprep.subr.bf16.mxu0 %v2718_v17 }
 0x7b3   :  { %2721 = vmatpush3.bf16.msra.mxu0 %v2718_v17 }
 0x7b4   :  { %2723 = vmatprep.subr.bf16.mxu0 %v2722_v15 }
 0x7b7   :  { %2725 = vmatpush3.bf16.msra.mxu0 %v2722_v15 }
 0x7b8   :  { %2727 = vmatprep.subr.bf16.mxu0 %v2726_v26 }
 0x7bb   :  { %2729 = vmatpush3.bf16.msra.mxu0 %v2726_v26 }
 0x7bc   :  { %2731 = vmatprep.subr.bf16.mxu0 %v2730_v43 }
 0x7bf   :  { %2733 = vmatpush3.bf16.msra.mxu0 %v2730_v43 }
 0x7c0   :  { %2735 = vmatprep.subr.bf16.mxu0 %v2734_v39 }
 0x7c3   :  { %2737 = vmatpush3.bf16.msra.mxu0 %v2734_v39 }
 0x7c6   :  { %2167 = vmatmul.mubr.f32.vlgmr.msra.gmra.mrb[16].mxu0 %v3530_v47 }
 0x7c7   :  { %2169 = vmatprep.mubr.f32.mxu0 %v3576_v48 }
 0x7ca   :  { %2170 = vmatmul.mubr.f32.gmra.mrb[18].mxu0 %v3622_v50 }
 0x7cb   :  { %2172 = vmatprep.mubr.f32.mxu0 %v3668_v57 }
 0x7ce   :  { %2173 = vmatmul.mubr.f32.gmra.mrb[20].mxu0 %v3714_v63 }
 0x7cf   :  { %2175 = vmatprep.mubr.f32.mxu0 %v1701_v19 }
 0x879   :  { %v1775_v49 = vpop.f32.mrb[14].mxu0  ;;  %v1846_v53 = vpop.f32.mrb[14].mxu1 }
 0x87a   :  { %v2754_v56 = vadd.f32 %v1775_v49, %v3466_v35  ;;  %v1777_v34 = vpop.f32.mrb[15].mxu0  ;;  %v1848_v58 = vpop.f32.mrb[15].mxu1  ;;  %v2770_v50 = vadd.f32 %v1846_v53, %v3472_v1  ;;  %v3772_v1 = vld [vmem:[%s3826_s5] ss:$0 sm:$0xff]  ;;  %s3139_s5 = smov [#allocation14]  }
 0x87b   :  { %v2755_v0 = vadd.f32 %v1777_v34, %v3468_v36  ;;  %v2771_v47 = vadd.f32 %v1848_v58, %v3474_v3  ;;  %s2041_s14 = sshll.u32 %s3139_s5, 4  ;;  %s2042_s14 = int_to_ptr.vmem [resolvable:$true] %s2041_s14 }
 0x87c   :  { %v2106_v21 = vmul.f32 -1.442695, %v2754_v56  ;;  %s3053_s19 = scalar_lea.vmem %s2042_s14, 128  ;;  %p3058_p13 = scmp.lt.s32.totalorder %s2042_s14, %s2042_s14 }
 0x87d   :  { %v2107_v22 = vmul.f32 -1.442695, %v2755_v0  ;;  %v2108_v48 = vmul.f32 -1.442695, %v2771_v47  ;;  %p3054_p12 = scmp.ne.s32.totalorder %s2042_s14, %s3053_s19  ;;  %p3059_p0 = scmp.lt.s32.totalorder %s3053_s19, %s3053_s19 }
 0x87e   :  { %2927 = vpow2.f32 %v2106_v21 }
 0x87f   :  { %2929 = vpow2.f32 %v2107_v22  ;;  %p3060_p1 = por %p3059_p0, %p3058_p13 }
 0x880   :  { %2931 = vpow2.f32 %v2108_v48 }
 0x881   :  { %2933 = vtanh.f32 %v2770_v50  ;;  %p3061_p2 = pnand %p3060_p1, %p3054_p12 }
 0x888   :  { %v2928_v57 = vpop.eup %2927 }
 0x889   :  { %v2930_v63 = vpop.eup %2929  ;;  %v1854_v28 = vadd.f32 1.0, %v2928_v57 }
 0x88a   :  { %v1860_v32 = vadd.f32 1.0, %v2930_v63  ;;  %v2932_v35 = vpop.eup %2931 }
 0x88b   :  { %2935 = vrcp.f32 %v1854_v28  ;;  %v2934_v42 = vpop.eup %2933  ;;  %v1867_v55 = vadd.f32 1.0, %v2932_v35 }
 0x88c   :  { %2937 = vrcp.f32 %v1860_v32 }
 0x88d   :  { %2939 = vrcp.f32 %v1867_v55 }
 0x895   :  { %v2936_v36 = vpop.eup %2935 }
 0x896   :  { %v2938_v46 = vpop.eup %2937  ;;  %v1871_v54 = vmul.f32 %v2936_v36, %v2934_v42 }
 0x897   :  { %v1870_v61 = vmul.f32 %v2938_v46, %v3755_v60  ;;  %v2940_v51 = vpop.eup %2939 }
 0x899   :  { %v2168_v3 = vpop.f32.mrb[16].mxu0  ;;  %v1872_v62 = vadd.f32 %v1871_v54, %v1870_v61 }
 0x89a   :  { %v1980_v5 = vadd.f32 %v2168_v3, %v3772_v1  ;;  %v1974_v6 = vpop.f32.mrb[17].mxu0 }
 0x89b   :  { %v1975_v12 = vadd.f32 %v3772_v1, %v1974_v6  ;;  %2941 = vtanh.f32 %v1872_v62  ;;  %2022 = vst [vmem:[#allocation16] sm:$0xff] %v1872_v62 }
 0x89c   :  { %2014 = vst [vmem:[#allocation13 + $0x8] sm:$0xff] %v1980_v5 }
 0x89d   :  { %2013 = vst [vmem:[#allocation13] sm:$0xff] %v1975_v12  ;;  %v2171_v13 = vpop.f32.mrb[18].mxu0 }
 0x89e   :  { %v1990_v20 = vadd.f32 %v2171_v13, %v3772_v1  ;;  %v1984_v30 = vpop.f32.mrb[19].mxu0 }
 0x89f   :  { %v1985_v31 = vadd.f32 %v3772_v1, %v1984_v30 }
 0x8a0   :  { %2016 = vst [vmem:[#allocation13 + $0x18] sm:$0xff] %v1990_v20 }
 0x8a1   :  { %2015 = vst [vmem:[#allocation13 + $0x10] sm:$0xff] %v1985_v31  ;;  %v2174_v37 = vpop.f32.mrb[20].mxu0 }
 0x8a2   :  { %v2000_v38 = vadd.f32 %v2174_v37, %v3772_v1  ;;  %v1994_v44 = vpop.f32.mrb[21].mxu0 }
 0x8a3   :  { %v1995_v45 = vadd.f32 %v3772_v1, %v1994_v44 }
 0x8a4   :  { %2018 = vst [vmem:[#allocation13 + $0x28] sm:$0xff] %v2000_v38 }
 0x8a5   :  { %v2942_v52 = vpop.eup %2941  ;;  %2017 = vst [vmem:[#allocation13 + $0x20] sm:$0xff] %v1995_v45 }
 0x8a6   :  { %v1874_v59 = vmul.f32 %v2942_v52, %v2940_v51 }
 0x8a8   :  { %2176 = vmatmul.mubr.f32.gmra.mrb[22].mxu0 %v1874_v59  ;;  %2021 = vst [vmem:[#allocation14] sm:$0xff] %v1874_v59 }
 0x8a9   :  { %3064 = shalt.err (!%p3061_p2)
}
 0x8aa   :  { %s3065_s22 = scalar_lea.hbm %s3830_s9, 128 }
 0x8ab   :  { %p3066_p3 = scmp.ne.s32.totalorder %s3830_s9, %s3065_s22  ;;  %p3069_p4 = scmp.lt.u32.totalorder %s3065_s22, %s3830_s9 }
 0x8ad   :  { %p3071_p5 = pnand %p3069_p4, %p3066_p3 }
 0x8af   :  { %3074 = shalt.err (!%p3071_p5)
}
 0x8b0   :  { %2044 = dma.vmem_to_hbm [thread:$0]  %s2042_s14, 128, %s3830_s9, [#allocation15]  }
 0x8b1   :  { %s3140_s11 = smov [#allocation16]  }
 0x8b2   :  { %s2051_s12 = sshll.u32 %s3140_s11, 4  ;;  %s2052_s12 = int_to_ptr.vmem [resolvable:$true] %s2051_s12 }
 0x8b3   :  { %s3075_s13 = scalar_lea.vmem %s2052_s12, 128  ;;  %p3080_p7 = scmp.lt.s32.totalorder %s2052_s12, %s2052_s12 }
 0x8b4   :  { %p3076_p6 = scmp.ne.s32.totalorder %s2052_s12, %s3075_s13  ;;  %p3081_p8 = scmp.lt.s32.totalorder %s3075_s13, %s3075_s13 }
 0x8b6   :  { %p3082_p9 = por %p3081_p8, %p3080_p7 }
 0x8b8   :  { %p3083_p10 = pnand %p3082_p9, %p3076_p6 }
 0x8ba   :  { %3086 = shalt.err (!%p3083_p10)
}
 0x8bb   :  { %s3087_s1 = scalar_lea.hbm %s3831_s10, 128 }
 0x8bc   :  { %p3088_p11 = scmp.ne.s32.totalorder %s3831_s10, %s3087_s1  ;;  %p3091_p12 = scmp.lt.u32.totalorder %s3087_s1, %s3831_s10 }
 0x8be   :  { %p3093_p13 = pnand %p3091_p12, %p3088_p11 }
 0x8c0   :  { %3096 = shalt.err (!%p3093_p13)
}
 0x8c1   :  { %2054 = dma.vmem_to_hbm [thread:$0]  %s2052_s12, 128, %s3831_s10, [#allocation15]  }
 0x8c2   :  { %s3141_s16 = smov [#allocation13]  }
 0x8c3   :  { %s2028_s7 = sshll.u32 %s3141_s16, 4  ;;  %s2029_s7 = int_to_ptr.vmem [resolvable:$true] %s2028_s7 }
 0x8c4   :  { %s3097_s18 = scalar_lea.vmem %s2029_s7, 1024  ;;  %p3102_p1 = scmp.lt.s32.totalorder %s2029_s7, %s2029_s7 }
 0x8c5   :  { %p3098_p0 = scmp.ne.s32.totalorder %s2029_s7, %s3097_s18  ;;  %p3103_p2 = scmp.lt.s32.totalorder %s3097_s18, %s3097_s18 }
 0x8c7   :  { %p3104_p3 = por %p3103_p2, %p3102_p1 }
 0x8c9   :  { %p3105_p4 = pnand %p3104_p3, %p3098_p0 }
 0x97b   :  { %v2177_v60 = vpop.f32.mrb[22].mxu0 }
 0x97c   :  { %v2010_v4 = vadd.f32 %v2177_v60, %v3772_v1  ;;  %v2004_v7 = vpop.f32.mrb[23].mxu0 }
 0x97d   :  { %v2005_v14 = vadd.f32 %v3772_v1, %v2004_v7 }
 0x97e   :  { %2020 = vst [vmem:[#allocation13 + $0x38] sm:$0xff] %v2010_v4 }
 0x97f   :  { %2019 = vst [vmem:[#allocation13 + $0x30] sm:$0xff] %v2005_v14 }
 0x980   :  { %3108 = shalt.err (!%p3105_p4)
}
 0x981   :  { %s3109_s14 = scalar_lea.hbm %s3829_s8, 1024 }
 0x982   :  { %p3110_p5 = scmp.ne.s32.totalorder %s3829_s8, %s3109_s14  ;;  %p3113_p6 = scmp.lt.u32.totalorder %s3109_s14, %s3829_s8 }
 0x984   :  { %p3115_p7 = pnand %p3113_p6, %p3110_p5 }
 0x986   :  { %3118 = shalt.err (!%p3115_p7)
}
 0x987   :  { %2034 = dma.vmem_to_hbm [thread:$0]  %s2029_s7, 1024, %s3829_s8, [#allocation6], %s3134_s3, %s3134_s3, %s3135_s28  }
 0x988   :  { %3125 = dma.done.wait [#allocation6], 1024  }
 0x989   :  { %3126 = vsyncadd [#allocation6], 4294966272 }
 0x98a   :  { %3127 = dma.done.wait [#allocation15], 256  }
 0x98b   :  { %3128 = vsyncadd [#allocation15], 4294967040 }
 0x98c   :  { %2064 = vsyncpa [#allocation5], 1 }
 0x98d   :  { %2065 = vsyncpa [#allocation8], 1 }
 0x98e   :  { %2066 = vsyncpa [#allocation11], 1 }
 0x98f   :  { %2067 = vsyncpa [#allocation6], 1 }
 0x990   :  { %2068 = vsyncpa [#allocation15], 1 }

</bundles_post_ra>
